<compile_context>
chip_gen: v7x
topology: tpu7x:2x2x1
jax: 0.10.0
libtpu: 0.0.40
codegen_flags: <defaults>
</compile_context>

<pallas_src>
import functools
import math

import jax
import jax.numpy as jnp
from jax import lax
from jax.experimental import pallas as pl
from jax.experimental.pallas import tpu as pltpu


def _abmil_kernel(x_ref,
                  w1_ref, b1_ref, w2_ref, b2_ref, w3_ref, b3_ref,
                  wa1_ref, ba1_ref, wa2t_ref, ba2_ref,
                  wd_ref, bd_ref,
                  out_ref, *, bags_per_block, instances_per_bag):
    bt = bags_per_block
    n = instances_per_bag
    inv_sqrt_n = 1.0 / math.sqrt(float(n))

    rows = x_ref[...]                                        # (Bt*N, dim_in) bf16

    # ---- encoder: 3x (Linear + ReLU), bf16 operands / f32 accumulation ----
    h = jnp.dot(rows, w1_ref[...], preferred_element_type=jnp.float32) + b1_ref[...]
    h = jnp.maximum(h, 0.0).astype(jnp.bfloat16)
    h = jnp.dot(h, w2_ref[...], preferred_element_type=jnp.float32) + b2_ref[...]
    h = jnp.maximum(h, 0.0).astype(jnp.bfloat16)
    h = jnp.dot(h, w3_ref[...], preferred_element_type=jnp.float32) + b3_ref[...]
    h = jnp.maximum(h, 0.0)                                  # (Bt*N, L) f32

    # ---- attention: Linear -> tanh -> (K == 1) per-row weight ----
    a = jnp.dot(h.astype(jnp.bfloat16), wa1_ref[...],
                preferred_element_type=jnp.float32) + ba1_ref[...]
    a = jnp.tanh(a)                                          # (Bt*N, D) f32
    # K == 1: a @ wa2 produces a single output column, so use a VPU multiply +
    # lane reduce instead of pushing a 1-column matmul through the MXU.
    logits = jnp.sum(a * wa2t_ref[...].astype(jnp.float32),
                     axis=-1, keepdims=True) + ba2_ref[...]  # (Bt*N, 1)

    # ---- per-bag softmax over the N instances, then / sqrt(N) ----
    lg = logits.reshape(bt, n, 1)
    mx = jnp.max(lg, axis=1, keepdims=True)                  # (Bt, 1, 1)
    e = jnp.exp(lg - mx)
    denom = jnp.sum(e, axis=1, keepdims=True)                # (Bt, 1, 1)
    alpha = e * pl.reciprocal(denom, approx=True) * inv_sqrt_n
    alpha = alpha.reshape(bt * n, 1)                         # (Bt*N, 1)

    # ---- pooling (K == 1): M[b] = sum_n alpha[b, n] * H[b, n, :] ----
    weighted = alpha * h                                     # (Bt*N, L) f32
    m = jnp.sum(weighted.reshape(bt, n, h.shape[-1]), axis=1)  # (Bt, L)

    # ---- decoder: Linear + ReLU ----
    out = jnp.dot(m.astype(jnp.bfloat16), wd_ref[...],
                  preferred_element_type=jnp.float32) + bd_ref[...]
    out_ref[...] = jnp.maximum(out, 0.0).astype(out_ref.dtype)   # (Bt, L)


def _choose_bags_per_block(B, N, target_rows=256):
    """Largest divisor Bt of B with 8-aligned block dims, Bt*N <= target_rows rows,
    and >= 2 grid steps (keeps both v7x TensorCores busy). Falls back to Bt = B
    (single grid step; block == full array, so no (8,128) alignment constraint)."""
    best = B
    for bt in range(1, B):
        if B % bt:
            continue
        if bt % 8 or (bt * N) % 8:
            continue
        if bt * N > target_rows:
            continue
        if B // bt < 2:
            continue
        best = bt          # loop is ascending -> keep the largest valid Bt
    return best


def abmil_forward(x, params):
    """x: (B, N, dim_in) float32. Returns (outputs, outputs_detached), outputs: (B*K, L)."""
    B, N, dim_in = x.shape
    L = params["w1"].shape[1]
    D = params["wa1"].shape[1]
    K = params["wa2"].shape[1]
    if K != 1:
        # TODO(synk): kernel is specialized to K == 1 (the module default); general K
        # would reuse the MXU path for the attention projection and pooling.
        raise NotImplementedError("Pallas ABMIL kernel is specialized to K == 1")

    bt = _choose_bags_per_block(B, N)
    grid = (B // bt,)
    rows_per_block = bt * N

    # bf16 matmul operands (f32 accumulation inside the kernel); biases stay f32.
    x2d = x.reshape(B * N, dim_in).astype(jnp.bfloat16)
    to_bf16 = lambda a: a.astype(jnp.bfloat16)
    w1, w2, w3 = to_bf16(params["w1"]), to_bf16(params["w2"]), to_bf16(params["w3"])
    wa1 = to_bf16(params["wa1"])
    wa2t = to_bf16(params["wa2"].T)                 # (1, D) row for the VPU reduce
    wd = to_bf16(params["wd"])
    b1, b2, b3 = params["b1"], params["b2"], params["b3"]
    ba1, ba2, bd = params["ba1"], params["ba2"], params["bd"]

    full2d = lambda g: (0, 0)
    weight_specs = [
        pl.BlockSpec((dim_in, L), full2d),  # w1
        pl.BlockSpec((1, L), full2d),       # b1
        pl.BlockSpec((L, L), full2d),       # w2
        pl.BlockSpec((1, L), full2d),       # b2
        pl.BlockSpec((L, L), full2d),       # w3
        pl.BlockSpec((1, L), full2d),       # b3
        pl.BlockSpec((L, D), full2d),       # wa1
        pl.BlockSpec((1, D), full2d),       # ba1
        pl.BlockSpec((1, D), full2d),       # wa2^T
        pl.BlockSpec((1, 1), full2d),       # ba2
        pl.BlockSpec((L, L), full2d),       # wd
        pl.BlockSpec((1, L), full2d),       # bd
    ]

    kernel = functools.partial(_abmil_kernel,
                               bags_per_block=bt, instances_per_bag=N)

    out = pl.pallas_call(
        kernel,
        out_shape=jax.ShapeDtypeStruct((B, L), jnp.float32),
        grid_spec=pltpu.PrefetchScalarGridSpec(
            num_scalar_prefetch=0,
            grid=grid,
            in_specs=[pl.BlockSpec((rows_per_block, dim_in), lambda g: (g, 0))]
                     + weight_specs,
            out_specs=pl.BlockSpec((bt, L), lambda g: (g, 0)),
        ),
        compiler_params=pltpu.CompilerParams(dimension_semantics=("parallel",)),
        # TODO(synk): at production N/dim_in sizes, set vmem_limit_bytes explicitly
        # (v7x has only 64 MiB physical VMEM) and tile the encoder chain over row
        # chunks if the (Bt*N, L) f32 intermediates approach vreg/VMEM limits.
    )(x2d,
      w1, b1, w2, b2, w3, b3,
      wa1, ba1, wa2t, ba2,
      wd, bd)

    outputs = out.reshape(B * K, L)
    # forward returns (outputs, outputs.detach())
    return outputs, lax.stop_gradient(outputs)


def _init_linear(key, fan_in, fan_out):
    # Mirrors torch.nn.Linear default init: U(-1/sqrt(fan_in), 1/sqrt(fan_in)).
    kw, kb = jax.random.split(key)
    bound = 1.0 / math.sqrt(fan_in)
    w = jax.random.uniform(kw, (fan_in, fan_out), jnp.float32, -bound, bound)
    b = jax.random.uniform(kb, (1, fan_out), jnp.float32, -bound, bound)
    return w, b


def init_abmil_params(key, dim_in, L=128, D=128, K=1):
    keys = jax.random.split(key, 6)
    w1, b1 = _init_linear(keys[0], dim_in, L)
    w2, b2 = _init_linear(keys[1], L, L)
    w3, b3 = _init_linear(keys[2], L, L)
    wa1, ba1 = _init_linear(keys[3], L, D)
    wa2, ba2 = _init_linear(keys[4], D, K)
    wd, bd = _init_linear(keys[5], L, L)
    # TODO(synk): self.fc (Linear(L, dim_out)) is defined in __init__ but never used
    # in forward; it is intentionally omitted here.
    return dict(w1=w1, b1=b1, w2=w2, b2=b2, w3=w3, b3=b3,
                wa1=wa1, ba1=ba1, wa2=wa2, ba2=ba2, wd=wd, bd=bd)


def abmil_reference(x, params):
    """Pure-JAX f32 reference of bag_forward / batch_forward."""
    def bag_fwd(bag):
        h = jnp.maximum(bag @ params["w1"] + params["b1"], 0.0)
        h = jnp.maximum(h @ params["w2"] + params["b2"], 0.0)
        h = jnp.maximum(h @ params["w3"] + params["b3"], 0.0)
        a = jnp.tanh(h @ params["wa1"] + params["ba1"]) @ params["wa2"] + params["ba2"]
        a = a.T                                            # (K, N)
        a = jax.nn.softmax(a, axis=1)
        a = a / math.sqrt(a.shape[-1])
        m = a @ h                                          # (K, L)
        return jnp.maximum(m @ params["wd"] + params["bd"], 0.0)
    outs = jax.vmap(bag_fwd)(x)                            # (B, K, L)
    return outs.reshape(-1, outs.shape[-1])


if __name__ == "__main__":
    B, N, dim_in = 32, 8, 32          # 32 bags of 8 instances -> 2 grid steps of 128 rows
    L, D, K = 128, 128, 1

    key = jax.random.PRNGKey(0)
    kx, kp = jax.random.split(key)
    x = jax.random.normal(kx, (B, N, dim_in), dtype=jnp.float32)
    params = init_abmil_params(kp, dim_in, L=L, D=D, K=K)

    outputs, outputs_detached = abmil_forward(x, params)
    jax.block_until_ready(outputs)

    ref = abmil_reference(x, params)
    assert outputs.shape == (B * K, L), outputs.shape
    # bf16 matmul operands (f32 accumulation) -> relaxed tolerance vs the f32 reference.
    assert jnp.allclose(outputs, ref, atol=5e-2, rtol=5e-2), "mismatch vs JAX reference"

    print("KERNEL_OK")
</pallas_src>

<mosaic_0001>
module attributes {stable_mosaic.version = 11 : i64} {
  func.func @_abmil_kernel(%arg0: i32, %arg1: memref<128x32xbf16, #tpu.memory_space<vmem>>, %arg2: memref<32x128xbf16, #tpu.memory_space<vmem>>, %arg3: memref<1x128xf32, #tpu.memory_space<vmem>>, %arg4: memref<128x128xbf16, #tpu.memory_space<vmem>>, %arg5: memref<1x128xf32, #tpu.memory_space<vmem>>, %arg6: memref<128x128xbf16, #tpu.memory_space<vmem>>, %arg7: memref<1x128xf32, #tpu.memory_space<vmem>>, %arg8: memref<128x128xbf16, #tpu.memory_space<vmem>>, %arg9: memref<1x128xf32, #tpu.memory_space<vmem>>, %arg10: memref<1x128xbf16, #tpu.memory_space<vmem>>, %arg11: memref<1x1xf32, #tpu.memory_space<vmem>>, %arg12: memref<128x128xbf16, #tpu.memory_space<vmem>>, %arg13: memref<1x128xf32, #tpu.memory_space<vmem>>, %arg14: memref<16x128xf32, #tpu.memory_space<vmem>>) attributes {dimension_semantics = [#tpu.dimension_semantics<parallel>], iteration_bounds = array<i64: 2>, scalar_prefetch = 0 : i64, scratch_operands = 0 : i64, tpu.core_type = #tpu.core_type<tc>, window_params = [{transform_indices = @transform_0, window_bounds = array<i64: 128, 32>}, {pipeline_mode = #tpu.pipeline_mode<synchronous>, transform_indices = @transform_1, window_bounds = array<i64: 32, 128>}, {pipeline_mode = #tpu.pipeline_mode<synchronous>, transform_indices = @transform_2, window_bounds = array<i64: 1, 128>}, {pipeline_mode = #tpu.pipeline_mode<synchronous>, transform_indices = @transform_3, window_bounds = array<i64: 128, 128>}, {pipeline_mode = #tpu.pipeline_mode<synchronous>, transform_indices = @transform_4, window_bounds = array<i64: 1, 128>}, {pipeline_mode = #tpu.pipeline_mode<synchronous>, transform_indices = @transform_5, window_bounds = array<i64: 128, 128>}, {pipeline_mode = #tpu.pipeline_mode<synchronous>, transform_indices = @transform_6, window_bounds = array<i64: 1, 128>}, {pipeline_mode = #tpu.pipeline_mode<synchronous>, transform_indices = @transform_7, window_bounds = array<i64: 128, 128>}, {pipeline_mode = #tpu.pipeline_mode<synchronous>, transform_indices = @transform_8, window_bounds = array<i64: 1, 128>}, {pipeline_mode = #tpu.pipeline_mode<synchronous>, transform_indices = @transform_9, window_bounds = array<i64: 1, 128>}, {pipeline_mode = #tpu.pipeline_mode<synchronous>, transform_indices = @transform_10, window_bounds = array<i64: 1, 1>}, {pipeline_mode = #tpu.pipeline_mode<synchronous>, transform_indices = @transform_11, window_bounds = array<i64: 128, 128>}, {pipeline_mode = #tpu.pipeline_mode<synchronous>, transform_indices = @transform_12, window_bounds = array<i64: 1, 128>}, {transform_indices = @transform_13, window_bounds = array<i64: 16, 128>}]} {
    %c0 = arith.constant 0 : index
    %c0_0 = arith.constant 0 : index
    %0 = vector.load %arg1[%c0, %c0_0] : memref<128x32xbf16, #tpu.memory_space<vmem>>, vector<128x32xbf16>
    %c0_1 = arith.constant 0 : index
    %c0_2 = arith.constant 0 : index
    %1 = vector.load %arg2[%c0_1, %c0_2] : memref<32x128xbf16, #tpu.memory_space<vmem>>, vector<32x128xbf16>
    %cst = arith.constant dense<0.000000e+00> : vector<128x128xf32>
    %2 = tpu.matmul %0, %1, %cst {dimension_numbers = #tpu.dot_dimension_numbers<[1], [0], [0], [1], [0, 0, 1, 1], [], []>} : vector<128x32xbf16>, vector<32x128xbf16>, vector<128x128xf32> -> vector<128x128xf32>
    %c0_3 = arith.constant 0 : index
    %c0_4 = arith.constant 0 : index
    %3 = vector.load %arg3[%c0_3, %c0_4] : memref<1x128xf32, #tpu.memory_space<vmem>>, vector<1x128xf32>
    %4 = vector.broadcast %3 : vector<1x128xf32> to vector<128x128xf32>
    %5 = arith.addf %2, %4 : vector<128x128xf32>
    %cst_5 = arith.constant 0.000000e+00 : f32
    %6 = vector.broadcast %cst_5 : f32 to vector<128x128xf32>
    %7 = arith.maximumf %5, %6 : vector<128x128xf32>
    %8 = arith.truncf %7 : vector<128x128xf32> to vector<128x128xbf16>
    %c0_6 = arith.constant 0 : index
    %c0_7 = arith.constant 0 : index
    %9 = vector.load %arg4[%c0_6, %c0_7] : memref<128x128xbf16, #tpu.memory_space<vmem>>, vector<128x128xbf16>
    %cst_8 = arith.constant dense<0.000000e+00> : vector<128x128xf32>
    %10 = tpu.matmul %8, %9, %cst_8 {dimension_numbers = #tpu.dot_dimension_numbers<[1], [0], [0], [1], [0, 0, 1, 1], [], []>} : vector<128x128xbf16>, vector<128x128xbf16>, vector<128x128xf32> -> vector<128x128xf32>
    %c0_9 = arith.constant 0 : index
    %c0_10 = arith.constant 0 : index
    %11 = vector.load %arg5[%c0_9, %c0_10] : memref<1x128xf32, #tpu.memory_space<vmem>>, vector<1x128xf32>
    %12 = vector.broadcast %11 : vector<1x128xf32> to vector<128x128xf32>
    %13 = arith.addf %10, %12 : vector<128x128xf32>
    %cst_11 = arith.constant 0.000000e+00 : f32
    %14 = vector.broadcast %cst_11 : f32 to vector<128x128xf32>
    %15 = arith.maximumf %13, %14 : vector<128x128xf32>
    %16 = arith.truncf %15 : vector<128x128xf32> to vector<128x128xbf16>
    %c0_12 = arith.constant 0 : index
    %c0_13 = arith.constant 0 : index
    %17 = vector.load %arg6[%c0_12, %c0_13] : memref<128x128xbf16, #tpu.memory_space<vmem>>, vector<128x128xbf16>
    %cst_14 = arith.constant dense<0.000000e+00> : vector<128x128xf32>
    %18 = tpu.matmul %16, %17, %cst_14 {dimension_numbers = #tpu.dot_dimension_numbers<[1], [0], [0], [1], [0, 0, 1, 1], [], []>} : vector<128x128xbf16>, vector<128x128xbf16>, vector<128x128xf32> -> vector<128x128xf32>
    %c0_15 = arith.constant 0 : index
    %c0_16 = arith.constant 0 : index
    %19 = vector.load %arg7[%c0_15, %c0_16] : memref<1x128xf32, #tpu.memory_space<vmem>>, vector<1x128xf32>
    %20 = vector.broadcast %19 : vector<1x128xf32> to vector<128x128xf32>
    %21 = arith.addf %18, %20 : vector<128x128xf32>
    %cst_17 = arith.constant 0.000000e+00 : f32
    %22 = vector.broadcast %cst_17 : f32 to vector<128x128xf32>
    %23 = arith.maximumf %21, %22 : vector<128x128xf32>
    %24 = arith.truncf %23 : vector<128x128xf32> to vector<128x128xbf16>
    %c0_18 = arith.constant 0 : index
    %c0_19 = arith.constant 0 : index
    %25 = vector.load %arg8[%c0_18, %c0_19] : memref<128x128xbf16, #tpu.memory_space<vmem>>, vector<128x128xbf16>
    %cst_20 = arith.constant dense<0.000000e+00> : vector<128x128xf32>
    %26 = tpu.matmul %24, %25, %cst_20 {dimension_numbers = #tpu.dot_dimension_numbers<[1], [0], [0], [1], [0, 0, 1, 1], [], []>} : vector<128x128xbf16>, vector<128x128xbf16>, vector<128x128xf32> -> vector<128x128xf32>
    %c0_21 = arith.constant 0 : index
    %c0_22 = arith.constant 0 : index
    %27 = vector.load %arg9[%c0_21, %c0_22] : memref<1x128xf32, #tpu.memory_space<vmem>>, vector<1x128xf32>
    %28 = vector.broadcast %27 : vector<1x128xf32> to vector<128x128xf32>
    %29 = arith.addf %26, %28 : vector<128x128xf32>
    %30 = math.tanh %29 : vector<128x128xf32>
    %c0_23 = arith.constant 0 : index
    %c0_24 = arith.constant 0 : index
    %31 = vector.load %arg10[%c0_23, %c0_24] : memref<1x128xbf16, #tpu.memory_space<vmem>>, vector<1x128xbf16>
    %32 = arith.extf %31 : vector<1x128xbf16> to vector<1x128xf32>
    %33 = vector.broadcast %32 : vector<1x128xf32> to vector<128x128xf32>
    %34 = arith.mulf %30, %33 : vector<128x128xf32>
    %cst_25 = arith.constant dense<0.000000e+00> : vector<128xf32>
    %35 = vector.multi_reduction <add>, %34, %cst_25 [1] : vector<128x128xf32> to vector<128xf32>
    %36 = vector.shape_cast %35 : vector<128xf32> to vector<128x1xf32>
    %c0_26 = arith.constant 0 : index
    %c0_27 = arith.constant 0 : index
    %37 = vector.load %arg11[%c0_26, %c0_27] : memref<1x1xf32, #tpu.memory_space<vmem>>, vector<1x1xf32>
    %38 = vector.broadcast %37 : vector<1x1xf32> to vector<128x1xf32>
    %39 = arith.addf %36, %38 : vector<128x1xf32>
    %40 = vector.shape_cast %39 : vector<128x1xf32> to vector<16x8x1xf32>
    %cst_28 = arith.constant dense<0xFF800000> : vector<16x1xf32>
    %41 = vector.multi_reduction <maximumf>, %40, %cst_28 [1] : vector<16x8x1xf32> to vector<16x1xf32>
    %42 = vector.shape_cast %41 : vector<16x1xf32> to vector<16x1x1xf32>
    %43 = vector.broadcast %42 : vector<16x1x1xf32> to vector<16x8x1xf32>
    %44 = arith.subf %40, %43 : vector<16x8x1xf32>
    %45 = math.exp %44 : vector<16x8x1xf32>
    %cst_29 = arith.constant dense<0.000000e+00> : vector<16x1xf32>
    %46 = vector.multi_reduction <add>, %45, %cst_29 [1] : vector<16x8x1xf32> to vector<16x1xf32>
    %47 = vector.shape_cast %46 : vector<16x1xf32> to vector<16x1x1xf32>
    %48 = tpu.reciprocal %47 {approx = true} : vector<16x1x1xf32> -> vector<16x1x1xf32>
    %49 = vector.broadcast %48 : vector<16x1x1xf32> to vector<16x8x1xf32>
    %50 = arith.mulf %45, %49 : vector<16x8x1xf32>
    %cst_30 = arith.constant 0.353553385 : f32
    %51 = vector.broadcast %cst_30 : f32 to vector<16x8x1xf32>
    %52 = arith.mulf %50, %51 : vector<16x8x1xf32>
    %53 = vector.shape_cast %52 : vector<16x8x1xf32> to vector<128x1xf32>
    %54 = vector.broadcast %53 : vector<128x1xf32> to vector<128x128xf32>
    %55 = arith.mulf %54, %23 : vector<128x128xf32>
    %56 = vector.shape_cast %55 : vector<128x128xf32> to vector<16x8x128xf32>
    %cst_31 = arith.constant dense<0.000000e+00> : vector<16x128xf32>
    %57 = vector.multi_reduction <add>, %56, %cst_31 [1] : vector<16x8x128xf32> to vector<16x128xf32>
    %58 = arith.truncf %57 : vector<16x128xf32> to vector<16x128xbf16>
    %c0_32 = arith.constant 0 : index
    %c0_33 = arith.constant 0 : index
    %59 = vector.load %arg12[%c0_32, %c0_33] : memref<128x128xbf16, #tpu.memory_space<vmem>>, vector<128x128xbf16>
    %cst_34 = arith.constant dense<0.000000e+00> : vector<16x128xf32>
    %60 = tpu.matmul %58, %59, %cst_34 {dimension_numbers = #tpu.dot_dimension_numbers<[1], [0], [0], [1], [0, 0, 1, 1], [], []>} : vector<16x128xbf16>, vector<128x128xbf16>, vector<16x128xf32> -> vector<16x128xf32>
    %c0_35 = arith.constant 0 : index
    %c0_36 = arith.constant 0 : index
    %61 = vector.load %arg13[%c0_35, %c0_36] : memref<1x128xf32, #tpu.memory_space<vmem>>, vector<1x128xf32>
    %62 = vector.broadcast %61 : vector<1x128xf32> to vector<16x128xf32>
    %63 = arith.addf %60, %62 : vector<16x128xf32>
    %cst_37 = arith.constant 0.000000e+00 : f32
    %64 = vector.broadcast %cst_37 : f32 to vector<16x128xf32>
    %65 = arith.maximumf %63, %64 : vector<16x128xf32>
    %c0_38 = arith.constant 0 : index
    %c0_39 = arith.constant 0 : index
    %66 = vector.load %arg14[%c0_38, %c0_39] : memref<16x128xf32, #tpu.memory_space<vmem>>, vector<16x128xf32>
    tpu.vector_store %arg14[%c0_38, %c0_39], %65 {strides = array<i32>} : memref<16x128xf32, #tpu.memory_space<vmem>>, vector<16x128xf32>,
    return
  }
  func.func @transform_0(%arg0: i32) -> (i32, i32) {
    %c0_i32 = arith.constant 0 : i32
    %c0_i32_0 = arith.constant 0 : i32
    return %arg0, %c0_i32 : i32, i32
  }
  func.func @transform_1(%arg0: i32) -> (i32, i32) {
    %c0_i32 = arith.constant 0 : i32
    %c0_i32_0 = arith.constant 0 : i32
    %c0_i32_1 = arith.constant 0 : i32
    return %c0_i32, %c0_i32_0 : i32, i32
  }
  func.func @transform_2(%arg0: i32) -> (i32, i32) {
    %c0_i32 = arith.constant 0 : i32
    %c0_i32_0 = arith.constant 0 : i32
    %c0_i32_1 = arith.constant 0 : i32
    return %c0_i32, %c0_i32_0 : i32, i32
  }
  func.func @transform_3(%arg0: i32) -> (i32, i32) {
    %c0_i32 = arith.constant 0 : i32
    %c0_i32_0 = arith.constant 0 : i32
    %c0_i32_1 = arith.constant 0 : i32
    return %c0_i32, %c0_i32_0 : i32, i32
  }
  func.func @transform_4(%arg0: i32) -> (i32, i32) {
    %c0_i32 = arith.constant 0 : i32
    %c0_i32_0 = arith.constant 0 : i32
    %c0_i32_1 = arith.constant 0 : i32
    return %c0_i32, %c0_i32_0 : i32, i32
  }
  func.func @transform_5(%arg0: i32) -> (i32, i32) {
    %c0_i32 = arith.constant 0 : i32
    %c0_i32_0 = arith.constant 0 : i32
    %c0_i32_1 = arith.constant 0 : i32
    return %c0_i32, %c0_i32_0 : i32, i32
  }
  func.func @transform_6(%arg0: i32) -> (i32, i32) {
    %c0_i32 = arith.constant 0 : i32
    %c0_i32_0 = arith.constant 0 : i32
    %c0_i32_1 = arith.constant 0 : i32
    return %c0_i32, %c0_i32_0 : i32, i32
  }
  func.func @transform_7(%arg0: i32) -> (i32, i32) {
    %c0_i32 = arith.constant 0 : i32
    %c0_i32_0 = arith.constant 0 : i32
    %c0_i32_1 = arith.constant 0 : i32
    return %c0_i32, %c0_i32_0 : i32, i32
  }
  func.func @transform_8(%arg0: i32) -> (i32, i32) {
    %c0_i32 = arith.constant 0 : i32
    %c0_i32_0 = arith.constant 0 : i32
    %c0_i32_1 = arith.constant 0 : i32
    return %c0_i32, %c0_i32_0 : i32, i32
  }
  func.func @transform_9(%arg0: i32) -> (i32, i32) {
    %c0_i32 = arith.constant 0 : i32
    %c0_i32_0 = arith.constant 0 : i32
    %c0_i32_1 = arith.constant 0 : i32
    return %c0_i32, %c0_i32_0 : i32, i32
  }
  func.func @transform_10(%arg0: i32) -> (i32, i32) {
    %c0_i32 = arith.constant 0 : i32
    %c0_i32_0 = arith.constant 0 : i32
    %c0_i32_1 = arith.constant 0 : i32
    return %c0_i32, %c0_i32_0 : i32, i32
  }
  func.func @transform_11(%arg0: i32) -> (i32, i32) {
    %c0_i32 = arith.constant 0 : i32
    %c0_i32_0 = arith.constant 0 : i32
    %c0_i32_1 = arith.constant 0 : i32
    return %c0_i32, %c0_i32_0 : i32, i32
  }
  func.func @transform_12(%arg0: i32) -> (i32, i32) {
    %c0_i32 = arith.constant 0 : i32
    %c0_i32_0 = arith.constant 0 : i32
    %c0_i32_1 = arith.constant 0 : i32
    return %c0_i32, %c0_i32_0 : i32, i32
  }
  func.func @transform_13(%arg0: i32) -> (i32, i32) {
    %c0_i32 = arith.constant 0 : i32
    %c0_i32_0 = arith.constant 0 : i32
    return %arg0, %c0_i32 : i32, i32
  }
}

</mosaic_0001>

<bundles_post_ra>
// kernel: tpu_custom_call.1
= control target key start
LH: loop header
LB: loop body
LE: loop exit
PB: predicated region body
PF: predicated region fallthrough
CT: control target
= control target key end

     0   :  { %s3641_s0 = inlined_call_operand.vmem [shape: bf16[256,32], index: 0, kind: input, shape index: {}]   ;;  %s3642_s1 = inlined_call_operand.hbm [shape: bf16[32,128], index: 1, kind: input, shape index: {}]   ;;  %s3643_s2 = inlined_call_operand.vmem [shape: f32[1,128], index: 2, kind: input, shape index: {}]   ;;  %s3644_s3 = inlined_call_operand.vmem [shape: bf16[128,128], index: 3, kind: input, shape index: {}]   ;;  %s3645_s4 = inlined_call_operand.vmem [shape: f32[1,128], index: 4, kind: input, shape index: {}]   ;;  %s3646_s5 = inlined_call_operand.vmem [shape: bf16[128,128], index: 5, kind: input, shape index: {}]   ;;  %s3647_s6 = inlined_call_operand.hbm [shape: f32[1,128], index: 6, kind: input, shape index: {}]   ;;  %s3648_s7 = inlined_call_operand.hbm [shape: bf16[128,128], index: 7, kind: input, shape index: {}]   ;;  %s3649_s8 = inlined_call_operand.hbm [shape: f32[1,128], index: 8, kind: input, shape index: {}]   ;;  %s3650_s9 = inlined_call_operand.vmem [shape: bf16[1,128], index: 9, kind: input, shape index: {}]   ;;  %s3651_s10 = inlined_call_operand.<no memory space> [shape: f32[1,1], index: 10, kind: input, shape index: {}]   ;;  %s3652_s11 = inlined_call_operand.vmem [shape: bf16[128,128], index: 11, kind: input, shape index: {}]   ;;  %s3653_s12 = inlined_call_operand.vmem [shape: f32[1,128], index: 12, kind: input, shape index: {}]   ;;  %s3654_s13 = inlined_call_operand.hbm [shape: f32[32,128], index: 13, kind: output, shape index: {}]  }
   0x1   :  { %3681 = sst [smem:[#allocation23_spill]] %s3642_s1  ;;  %v18_v0 = vstv %s3651_s10 }
   0x2   :  { %3682 = sst [smem:[#allocation24_spill]] %s3647_s6  ;;  %19 = vst [vmem:[#allocation2] sm:$0x1] %v18_v0 }
   0x3   :  { %20 = vsyncpa [#allocation4], 0 }
   0x4   :  { %21 = vsyncpa [#allocation7], 0 }
   0x5   :  { %22 = vsyncpa [#allocation10], 0 }
   0x6   :  { %23 = vsyncpa [#allocation5], 0 }
   0x7   :  { %25 = vsyncpa [#allocation5 + $0x1], 0  ;;  %s2967_s27 = smov 0   ;;  %s2969_s28 = smov 0  }
   0x8   :  { %s2971_s29 = smov 0   ;;  %s2973_s30 = smov 0  }
   0x9 LB: > { %3683 = sst [smem:[#allocation16_spill]] %s2868_s27  ;;  %s2988_s10 = sadd.s32 4294967295, %s2880_s30   ;;  %s2880_s30 = sphi %s2973_s30, %s3726_s30   ;;  %s2876_s29 = sphi %s2971_s29, %s3728_s29   ;;  %s2872_s28 = sphi %s2969_s28, %s3730_s28   ;;  %s2868_s27 = sphi %s2967_s27, %s3729_s27  }
   0xa   : > { %3684 = sst [smem:[#allocation17_spill]] %s2876_s29  ;;  %s2187_s14 = sadd.s32 4294967294, %s2880_s30  }
   0xb   : > { %3685 = sst [smem:[#allocation18_spill]] %s2880_s30  ;;  %s2992_s15 = sadd.s32 1, %s2880_s30  }
   0xc   : > { %3686 = sst [smem:[#allocation19_spill]] %s2992_s15  ;;  %s316_s16 = sadd.s32 1, %s2876_s29 }
   0xd   : > { %s313_s17 = ssub.s32 %s2880_s30, %s2992_s15  ;;  %p326_p0 = scmp.ne.s32.totalorder %s2876_s29, %s2872_s28 }
   0xe   : > { %p314_p1 = scmp.eq.s32.totalorder %s313_s17, 0  ;;  %p327_p2 = scmp.eq.s32.totalorder %s2988_s10, 1 }
   0xf   : > { %p332_p3 = scmp.ne.s32.totalorder %s2872_s28, %s2868_s27  ;;  %p333_p4 = scmp.eq.s32.totalorder %s2187_s14, 1 }
  0x10   : > { %s3003_s18 = scalar_select %p314_p1, %s2876_s29, %s316_s16  }
  0x11   : > { %p3005_p5 = por %p327_p2, %p326_p0  ;;  %p3009_p6 = por %p333_p4, %p332_p3 }
  0x12   : > { %3687 = sst [smem:[#allocation20_spill]] %s3003_s18  ;;  %p2188_p7 = scmp.ge.s32.totalorder %s2880_s30, 1 }
  0x13   : > { %s3688_s19 = scalar_select %p3005_p5, 1, 0 }
  0x14   : > { %s3689_s20 = scalar_select %p3009_p6, 1, 0 }
  0x15   : > { %p340_p8 = scmp.lt.s32.totalorder %s2880_s30, 3  ;;  %p3659_p9 = scmp.eq.s32.totalorder %s2988_s10, 0 }
  0x16   : > { %3690 = sst [smem:[#allocation21_spill]] %s3689_s20  ;;  %s2882_s22 = smov [#allocation6]  }
  0x17   : > { %p3016_p10 = pnand %p2188_p7, %p340_p8  ;;  %s378_s23 = sshll.u32 %s2882_s22, 4  ;;  %s379_s23 = int_to_ptr.vmem [resolvable:$true] %s378_s23 }
  0x18   : > { %s2883_s24 = smov [#allocation3]   ;;  %s2884_s14 = smov [#allocation8]  }
  0x19   : > { %s3691_s21 = scalar_select %p3016_p10, 1, 0 }
  0x1a   : > { %p2485_p11 = pneg %p3016_p10  ;;  %s352_s25 = sshll.u32 %s2883_s24, 4  ;;  %s3028_s25 = int_to_ptr.vmem [resolvable:$true] %s352_s25 }
  0x1b   : > { %s3030_s16 = sshll.u32 %s2884_s14, 4  ;;  %s3693_s6 = sld [smem:[#allocation24_spill]]  ;;  %s389_s16 = int_to_ptr.vmem [resolvable:$true] %s3030_s16 }
  0x1c   : > { %p3024_p12 = pnand %p3659_p9, %p2485_p11 }
  0x1e   : > { %p3040_p0 = pneg %p3024_p12 }
  0x21   : > { %s2694_s22 = scalar_lea.hbm %s3693_s6, 16 }
  0x22   : > { %p2695_p13 = scmp.ne.s32.totalorder %s3693_s6, %s2694_s22  ;;  %p2701_p3 = scmp.lt.u32.totalorder %s2694_s22, %s3693_s6 }
  0x24   : > { %p2697_p1 = pnand %p3040_p0, %p2695_p13 }
  0x26   : > { %p2698_p2 = pneg %p2697_p1 }
  0x28   : > { %p2703_p4 = pnand %p2701_p3, %p2698_p2 }
  0x2a   : > { %2706 = shalt.err (!%p2703_p4)
}
  0x2b   : > { %s2707_s18 = scalar_lea.vmem %s379_s23, 16  ;;  %s2714_s29 = scalar_lea.vmem %s379_s23, 32 }
  0x2c   : > { %p2708_p7 = scmp.ne.s32.totalorder %s379_s23, %s2707_s18  ;;  %p2715_p9 = scmp.lt.s32.totalorder %s379_s23, %s379_s23 }
  0x2d   : > { %p2716_p6 = scmp.lt.s32.totalorder %s2714_s29, %s2707_s18 }
  0x2e   : > { %p2710_p8 = pnand %p2708_p7, %p3040_p0 }
  0x2f   : > { %p2717_p5 = por %p2716_p6, %p2715_p9 }
  0x30   : > { %p2711_p11 = pneg %p2710_p8 }
  0x32   : > { %p2718_p10 = pnand %p2717_p5, %p2711_p11 }
  0x34   : > { %2721 = shalt.err (!%p2718_p10)
}
  0x35   : > { %2491 = dma.hbm_to_vmem [thread:$0]  (!%p3024_p12), %s3693_s6, 16, %s379_s23, [#allocation7]  }
  0x36   : > { %s3695_s1 = sld [smem:[#allocation23_spill]] }
  0x3c   : > { %s2722_s14 = scalar_lea.hbm %s3695_s1, 256 }
  0x3d   : > { %p2723_p13 = scmp.ne.s32.totalorder %s3695_s1, %s2722_s14  ;;  %p2729_p5 = scmp.lt.u32.totalorder %s2722_s14, %s3695_s1 }
  0x3f   : > { %p2725_p1 = pnand %p2723_p13, %p3040_p0 }
  0x41   : > { %p2726_p6 = pneg %p2725_p1 }
  0x43   : > { %p2731_p9 = pnand %p2729_p5, %p2726_p6 }
  0x45   : > { %2734 = shalt.err (!%p2731_p9)
}
  0x46   : > { %s2735_s23 = scalar_lea.vmem %s3028_s25, 256  ;;  %p2743_p4 = scmp.lt.s32.totalorder %s3028_s25, %s3028_s25 }
  0x47   : > { %p2736_p10 = scmp.ne.s32.totalorder %s3028_s25, %s2735_s23  ;;  %p2744_p7 = scmp.lt.s32.totalorder %s2735_s23, %s2735_s23 }
  0x49   : > { %p2738_p2 = pnand %p2736_p10, %p3040_p0  ;;  %p2745_p8 = por %p2744_p7, %p2743_p4 }
  0x4b   : > { %p2739_p3 = pneg %p2738_p2 }
  0x4d   : > { %p2746_p11 = pnand %p2745_p8, %p2739_p3 }
  0x4f   : > { %2749 = shalt.err (!%p2746_p11)
}
  0x50   : > { %s2885_s27 = smov 64   ;;  %s2886_s30 = smov 4  }
  0x51   : > { %2488 = dma.hbm_to_vmem [thread:$0]  (!%p3024_p12), %s3695_s1, 256, %s3028_s25, [#allocation4], %s2885_s27, %s2885_s27, %s2886_s30  }
  0x52   : > { %s2750_s14 = scalar_lea.hbm %s3648_s7, 1024 }
  0x53   : > { %p2751_p13 = scmp.ne.s32.totalorder %s3648_s7, %s2750_s14  ;;  %p2757_p5 = scmp.lt.u32.totalorder %s2750_s14, %s3648_s7 }
  0x55   : > { %p2753_p1 = pnand %p2751_p13, %p3040_p0 }
  0x57   : > { %p2754_p6 = pneg %p2753_p1 }
  0x59   : > { %p2759_p9 = pnand %p2757_p5, %p2754_p6 }
  0x5b   : > { %2762 = shalt.err (!%p2759_p9)
}
  0x5c   : > { %s2763_s15 = scalar_lea.vmem %s389_s16, 1024  ;;  %p2771_p4 = scmp.lt.s32.totalorder %s389_s16, %s389_s16 }
  0x5d   : > { %p2764_p10 = scmp.ne.s32.totalorder %s389_s16, %s2763_s15  ;;  %p2772_p7 = scmp.lt.s32.totalorder %s2763_s15, %s2763_s15 }
  0x5f   : > { %p2766_p2 = pnand %p2764_p10, %p3040_p0  ;;  %p2773_p8 = por %p2772_p7, %p2771_p4 }
  0x61   : > { %p2767_p3 = pneg %p2766_p2 }
  0x63   : > { %p2774_p11 = pnand %p2773_p8, %p2767_p3 }
  0x65   : > { %2777 = shalt.err (!%p2774_p11)
}
  0x66   : > { %2494 = dma.hbm_to_vmem [thread:$0]  (!%p3024_p12), %s3648_s7, 1024, %s389_s16, [#allocation7], %s2885_s27, %s2885_s27, %s2886_s30  }
  0x67   : > { %s2887_s6 = smov [#allocation9]   ;;  %s2778_s18 = scalar_lea.hbm %s3649_s8, 16 }
  0x68   : > { %s402_s20 = sshll.u32 %s2887_s6, 4  ;;  %p2779_p13 = scmp.ne.s32.totalorder %s3649_s8, %s2778_s18  ;;  %s403_s20 = int_to_ptr.vmem [resolvable:$true] %s402_s20 }
  0x69   : > { %p2785_p5 = scmp.lt.u32.totalorder %s2778_s18, %s3649_s8 }
  0x6a   : > { %p2781_p1 = pnand %p2779_p13, %p3040_p0 }
  0x6c   : > { %p2782_p6 = pneg %p2781_p1 }
  0x6e   : > { %p2787_p9 = pnand %p2785_p5, %p2782_p6 }
  0x70   : > { %2790 = shalt.err (!%p2787_p9)
}
  0x71   : > { %s2791_s16 = scalar_lea.vmem %s403_s20, 16  ;;  %s2798_s27 = scalar_lea.vmem %s403_s20, 32 }
  0x72   : > { %p2792_p10 = scmp.ne.s32.totalorder %s403_s20, %s2791_s16  ;;  %p2799_p4 = scmp.lt.s32.totalorder %s403_s20, %s403_s20 }
  0x73   : > { %p2800_p7 = scmp.lt.s32.totalorder %s2798_s27, %s2791_s16 }
  0x74   : > { %p2794_p2 = pnand %p2792_p10, %p3040_p0 }
  0x75   : > { %p2801_p8 = por %p2800_p7, %p2799_p4 }
  0x76   : > { %p2795_p3 = pneg %p2794_p2 }
  0x78   : > { %p2802_p11 = pnand %p2801_p8, %p2795_p3 }
  0x7a   : > { %2805 = shalt.err (!%p2802_p11)
}
  0x7b   : > { %2497 = dma.hbm_to_vmem [thread:$0]  (!%p3024_p12), %s3649_s8, 16, %s403_s20, [#allocation10]  }
  0x7c   : > { %p3696_p13 = scmp.ne.s32.totalorder %s3691_s21, 0 }
  0x7e   : > { %436 = sbr.rel (%p3696_p13) target bundleno = 1687 (0x697), region = 72 }
  0x85   : > { %p3697_p1 = scmp.eq.s32.totalorder %s2988_s10, 0 }
  0x87   : > { %2851 = dma.done.wait (%p3697_p1), [#allocation4], 256   ;;  %p3698_p0 = pmov %p3697_p1 }
  0x89   : > { %2853 = vsyncadd (%p3698_p0), [#allocation4], 4294967040  ;;  %p3699_p6 = pmov %p3698_p0 }
  0x8a   : > { %p3700_p5 = pmov %p3698_p0 }
  0x8b   : > { %2855 = dma.done.wait (%p3699_p6), [#allocation7], 1040  }
  0x8c   : > { %2857 = vsyncadd (%p3700_p5), [#allocation7], 4294966256  ;;  %p3701_p9 = pmov %p3698_p0 }
  0x8d   : > { %p3702_p12 = pmov %p3698_p0 }
  0x8e   : > { %2859 = dma.done.wait (%p3701_p9), [#allocation10], 16  }
  0x8f   : > { %2861 = vsyncadd (%p3702_p12), [#allocation10], 4294967280  ;;  %s2200_s1 = sshll.u32 %s2988_s10, 4  ;;  %v2556_v1 = vld [vmem:[#allocation3] sm:$0xff]   ;;  %v2557_v2 = vld [vmem:[#allocation3 + $0x8] sm:$0xff]   ;;  %vm579_vm0 = vcmask 261120  }
  0x90   : > { %p493_p10 = scmp.lt.s32.totalorder %s2200_s1, 31  ;;  %2331 = vmatprep.subr.bf16.mxu0 %v2556_v1  ;;  %v2566_v6 = vld [vmem:[%s3644_s3] sm:$0xff]   ;;  %v2567_v7 = vld [vmem:[%s3644_s3 + $0x8] sm:$0xff]   ;;  %v2568_v9 = vld [vmem:[%s3644_s3 + $0x10] sm:$0xff]   ;;  %vm1370_vm1 = vcmask 7168   ;;  %vm2890_vm2 = vmmov 0  }
  0x91   : > { %2332 = vmatpush3.bf16.msra.mxu0 %v2556_v1  ;;  %2351 = vmatprep.subr.bf16.mxu1 %v2566_v6  ;;  %v2569_v11 = vld [vmem:[%s3644_s3 + $0x18] sm:$0xff]   ;;  %v2570_v13 = vld [vmem:[%s3644_s3 + $0x20] sm:$0xff]   ;;  %v2571_v15 = vld [vmem:[%s3644_s3 + $0x28] sm:$0xff]   ;;  %vm1954_vm3 = vcmask 1041409   ;;  %vm1956_vm4 = vcmask 1042434   ;;  %vm1958_vm5 = vcmask 1043459  }
  0x92   : > { %s3732_s1 = smov (!%p493_p10, %s2200_s1), 31  ;;  %2333 = vmatprep.subr.bf16.mxu0 %v2557_v2  ;;  %2352 = vmatpush3.bf16.msra.mxu1 %v2566_v6  ;;  %v2572_v17 = vld [vmem:[%s3644_s3 + $0x30] sm:$0xff]   ;;  %v2573_v18 = vld [vmem:[%s3644_s3 + $0x38] sm:$0xff]   ;;  %v2574_v19 = vld [vmem:[%s3646_s5] sm:$0xff]   ;;  %vm1960_vm6 = vcmask 1044484   ;;  %vm1962_vm7 = vcmask 1045509  }
  0x93   : > { %s2201_s21 = sshll.u32 %s3732_s1, 2  ;;  %2353 = vmatprep.subr.bf16.mxu1 %v2567_v7  ;;  %v2575_v20 = vld [vmem:[%s3646_s5 + $0x8] sm:$0xff]   ;;  %v2576_v21 = vld [vmem:[%s3646_s5 + $0x10] sm:$0xff]   ;;  %v2577_v22 = vld [vmem:[%s3646_s5 + $0x18] sm:$0xff]   ;;  %vm1964_vm8 = vcmask 1046534   ;;  %vm1966_vm9 = vcmask 1047559  }
  0x94   : > { %s3134_s17 = scalar_lea.vmem %s3641_s0, %s2201_s21  ;;  %v2578_v23 = vld [vmem:[%s3646_s5 + $0x20] sm:$0xff]   ;;  %v2579_v24 = vld [vmem:[%s3646_s5 + $0x28] sm:$0xff]   ;;  %s489_s14 = sand.u32 1, %s2872_s28  }
  0x95   : > { %v2558_v3 = vld [vmem:[%s3134_s17] sm:$0xff]   ;;  %v2559_v4 = vld [vmem:[%s3134_s17 + $0x8] sm:$0xff]   ;;  %2334 = vmatpush3.bf16.msra.mxu0 %v2557_v2  ;;  %v2560_v5 = vld [vmem:[%s3134_s17 + $0x10] sm:$0xff]   ;;  %s2199_s18 = sshll.u32 %s489_s14, 4  ;;  %s2263_s27 = sshll.u32 %s2988_s10, 8 }
  0x96   : > { %2335 = vmatprep.mubr.msk.bf16.mxu0 %vm579_vm0, %v2558_v3  ;;  %v2561_v8 = vld [vmem:[%s3134_s17 + $0x18] sm:$0xff]   ;;  %v2562_v10 = vld [vmem:[%s3134_s17 + $0x20] sm:$0xff]   ;;  %2354 = vmatpush3.bf16.msra.mxu1 %v2567_v7  ;;  %v2563_v12 = vld [vmem:[%s3134_s17 + $0x28] sm:$0xff]   ;;  %s491_s15 = scalar_lea.vmem [#allocation11], %s2199_s18  ;;  %s3598_s1 = scalar_lea.hbm %s3654_s13, %s2263_s27 }
  0x97   : > { %2355 = vmatprep.subr.bf16.mxu1 %v2568_v9  ;;  %v2564_v14 = vld [vmem:[%s3134_s17 + $0x30] sm:$0xff]   ;;  %v2565_v16 = vld [vmem:[%s3134_s17 + $0x38] sm:$0xff]   ;;  %2383 = vmatprep.subr.bf16.mxu0 %v2574_v19  ;;  %v2202_v25 = vld [vmem:[%s3643_s2] ss:$0 sm:$0xff]  ;;  %s2084_s16 = sshll.u32 %s491_s15, 4  ;;  %s3600_s21 = scalar_lea.sflag [#allocation5], %s489_s14  ;;  %s3593_s16 = int_to_ptr.vmem [resolvable:$true] %s2084_s16 }
  0x98   : > { %2336 = vmatmul.mubr.msk.bf16.vlgmr.msra.gmra.mrb[0].mxu0 %vm579_vm0, %v2559_v4  ;;  %s2806_s26 = scalar_lea.vmem %s3593_s16, 256  ;;  %p3721_p3 = scmp.ne.s32.totalorder %s3688_s19, 0 }
  0x99   : > { %2339 = vmatprep.mubr.msk.bf16.mxu0 %vm579_vm0, %v2560_v5  ;;  %2384 = vmatpush3.bf16.msra.mxu0 %v2574_v19  ;;  %v2581_v19 = vld [vmem:[%s3646_s5 + $0x38] sm:$0xff]   ;;  %p2807_p2 = scmp.ne.s32.totalorder %s3593_s16, %s2806_s26  ;;  %s2891_s10 = smov [#allocation11]  }
  0x9a   : > { %2356 = vmatpush3.bf16.msra.mxu1 %v2568_v9  ;;  %2385 = vmatprep.subr.bf16.mxu0 %v2575_v20  ;;  %s2810_s24 = sshll.u32 %s2891_s10, 4  ;;  %s2811_s24 = int_to_ptr.vmem [resolvable:$false] %s2810_s24 }
  0x9b   : > { %2357 = vmatprep.subr.bf16.mxu1 %v2569_v11  ;;  %p2808_p4 = pnand %p2807_p2, %p3721_p3  ;;  %s2812_s6 = scalar_lea.vmem %s2811_s24, 512 }
  0x9c   : > { %p2813_p8 = scmp.lt.s32.totalorder %s3593_s16, %s2811_s24  ;;  %p2814_p11 = scmp.lt.s32.totalorder %s2812_s6, %s2806_s26 }
  0x9d   : > { %2386 = vmatpush3.bf16.msra.mxu0 %v2575_v20  ;;  %v2582_v20 = vld [vmem:[#allocation8] sm:$0xff]   ;;  %p2809_p7 = pneg %p2808_p4 }
  0x9e   : > { %2358 = vmatpush3.bf16.msra.mxu1 %v2569_v11  ;;  %2387 = vmatprep.subr.bf16.mxu0 %v2576_v21  ;;  %p2815_p13 = por %p2814_p11, %p2813_p8 }
  0x9f   : > { %2359 = vmatprep.subr.bf16.mxu1 %v2570_v13 }
  0xa0   : > { %2340 = vmatmul.mubr.msk.bf16.gmra.mrb[4].mxu0 %vm579_vm0, %v2561_v8  ;;  %p2816_p1 = pnand %p2815_p13, %p2809_p7 }
  0xa1   : > { %2343 = vmatprep.mubr.msk.bf16.mxu0 %vm579_vm0, %v2562_v10  ;;  %2388 = vmatpush3.bf16.msra.mxu0 %v2576_v21  ;;  %v2583_v21 = vld [vmem:[#allocation8 + $0x8] sm:$0xff]  }
  0xa2   : > { %2360 = vmatpush3.bf16.msra.mxu1 %v2570_v13  ;;  %2389 = vmatprep.subr.bf16.mxu0 %v2577_v22 }
  0xa3   : > { %2361 = vmatprep.subr.bf16.mxu1 %v2571_v15 }
  0xa5   : > { %2390 = vmatpush3.bf16.msra.mxu0 %v2577_v22  ;;  %v2584_v22 = vld [vmem:[#allocation8 + $0x10] sm:$0xff]  }
  0xa6   : > { %2362 = vmatpush3.bf16.msra.mxu1 %v2571_v15  ;;  %2391 = vmatprep.subr.bf16.mxu0 %v2578_v23 }
  0xa7   : > { %2363 = vmatprep.subr.bf16.mxu1 %v2572_v17 }
  0xa8   : > { %2344 = vmatmul.mubr.msk.bf16.gmra.mrb[8].mxu0 %vm579_vm0, %v2563_v12 }
  0xa9   : > { %2347 = vmatprep.mubr.msk.bf16.mxu0 %vm579_vm0, %v2564_v14  ;;  %2392 = vmatpush3.bf16.msra.mxu0 %v2578_v23  ;;  %v2585_v23 = vld [vmem:[#allocation8 + $0x18] sm:$0xff]  }
  0xaa   : > { %2364 = vmatpush3.bf16.msra.mxu1 %v2572_v17  ;;  %2393 = vmatprep.subr.bf16.mxu0 %v2579_v24 }
  0xab   : > { %2365 = vmatprep.subr.bf16.mxu1 %v2573_v18 }
  0xad   : > { %2394 = vmatpush3.bf16.msra.mxu0 %v2579_v24  ;;  %v2586_v24 = vld [vmem:[#allocation8 + $0x20] sm:$0xff]  }
  0xae   : > { %2366 = vmatpush3.bf16.msra.mxu1 %v2573_v18  ;;  %v2580_v18 = vld [vmem:[%s3646_s5 + $0x30] sm:$0xff]  }
  0xaf   : > { %2395 = vmatprep.subr.bf16.mxu0 %v2580_v18  ;;  %2415 = vmatprep.subr.bf16.mxu1 %v2582_v20 }
  0xb0   : > { %2348 = vmatmul.mubr.msk.bf16.gmra.mrb[12].mxu0 %vm579_vm0, %v2565_v16 }
  0xb1   : > { %2396 = vmatpush3.bf16.msra.mxu0 %v2580_v18 }
  0xb2   : > { %2397 = vmatprep.subr.bf16.mxu0 %v2581_v19 }
  0xb5   : > { %2398 = vmatpush3.bf16.msra.mxu0 %v2581_v19  ;;  %v2588_v19 = vld [vmem:[#allocation8 + $0x30] sm:$0xff]  }
 0x16b   : > { %v2337_v26 = vpop.f32.mrb[0].mxu0 }
 0x16c   : > { %v647_v27 = vadd.f32 %v2337_v26, %v2202_v25  ;;  %v638_v28 = vpop.f32.mrb[1].mxu0  ;;  %v2221_v26 = vld [vmem:[%s3645_s4] ss:$0 sm:$0xff] }
 0x16d   : > { %v639_v29 = vadd.f32 %v2202_v25, %v638_v28  ;;  %v2338_v30 = vpop.f32.mrb[2].mxu0 }
 0x16e   : > { %v650_v31 = vadd.f32 %v2338_v30, %v2202_v25  ;;  %v641_v32 = vpop.f32.mrb[3].mxu0  ;;  %v703_v34 = vmax.f32 %v647_v27, 0.0 }
 0x16f   : > { %v642_v33 = vadd.f32 %v2202_v25, %v641_v32  ;;  %v701_v36 = vmax.f32 %v639_v29, 0.0 }
 0x170   : > { %v704_v35 = vmax.f32 %v650_v31, 0.0 }
 0x171   : > { %v702_v37 = vmax.f32 %v642_v33, 0.0 }
 0x172   : > { %v718_v38 = vpack.c.bf16 %v704_v35, %v703_v34 }
 0x173   : > { %v2341_v39 = vpop.f32.mrb[4].mxu0  ;;  %v717_v40 = vpack.c.bf16 %v702_v37, %v701_v36 }
 0x174   : > { %v663_v41 = vadd.f32 %v2341_v39, %v2202_v25  ;;  %v654_v42 = vpop.f32.mrb[5].mxu0 }
 0x175   : > { %v655_v43 = vadd.f32 %v2202_v25, %v654_v42  ;;  %v2342_v44 = vpop.f32.mrb[6].mxu0  ;;  %2367 = vmatprep.mubr.bf16.mxu1 %v717_v40 }
 0x176   : > { %v707_v45 = vmax.f32 %v663_v41, 0.0  ;;  %v666_v46 = vadd.f32 %v2342_v44, %v2202_v25  ;;  %v657_v47 = vpop.f32.mrb[7].mxu0  ;;  %2368 = vmatmul.mubr.bf16.vlgmr.msra.gmra.mrb[0].mxu1 %v718_v38 }
 0x177   : > { %v705_v48 = vmax.f32 %v655_v43, 0.0  ;;  %v658_v49 = vadd.f32 %v2202_v25, %v657_v47  ;;  %2416 = vmatpush3.bf16.msra.mxu1 %v2582_v20  ;;  %v2589_v20 = vld [vmem:[#allocation8 + $0x38] sm:$0xff]  }
 0x178   : > { %v708_v50 = vmax.f32 %v666_v46, 0.0  ;;  %2417 = vmatprep.subr.bf16.mxu1 %v2583_v21 }
 0x179   : > { %v706_v51 = vmax.f32 %v658_v49, 0.0 }
 0x17a   : > { %v720_v52 = vpack.c.bf16 %v708_v50, %v707_v45 }
 0x17b   : > { %v719_v53 = vpack.c.bf16 %v706_v51, %v705_v48  ;;  %v2345_v54 = vpop.f32.mrb[8].mxu0  ;;  %2418 = vmatpush3.bf16.msra.mxu1 %v2583_v21  ;;  %v2230_v21 = vld [vmem:[#allocation6] ss:$0 sm:$0xff] }
 0x17c   : > { %v679_v55 = vadd.f32 %v2345_v54, %v2202_v25  ;;  %v670_v56 = vpop.f32.mrb[9].mxu0  ;;  %2419 = vmatprep.subr.bf16.mxu1 %v2584_v22 }
 0x17d   : > { %v671_v57 = vadd.f32 %v2202_v25, %v670_v56  ;;  %v2346_v58 = vpop.f32.mrb[10].mxu0  ;;  %2371 = vmatprep.mubr.bf16.mxu1 %v719_v53 }
 0x17e   : > { %v711_v59 = vmax.f32 %v679_v55, 0.0  ;;  %v682_v60 = vadd.f32 %v2346_v58, %v2202_v25  ;;  %v673_v61 = vpop.f32.mrb[11].mxu0  ;;  %2372 = vmatmul.mubr.bf16.gmra.mrb[4].mxu1 %v720_v52 }
 0x17f   : > { %v709_v62 = vmax.f32 %v671_v57, 0.0  ;;  %v674_v63 = vadd.f32 %v2202_v25, %v673_v61  ;;  %2420 = vmatpush3.bf16.msra.mxu1 %v2584_v22 }
 0x180   : > { %v712_v0 = vmax.f32 %v682_v60, 0.0  ;;  %2421 = vmatprep.subr.bf16.mxu1 %v2585_v23 }
 0x181   : > { %v710_v1 = vmax.f32 %v674_v63, 0.0 }
 0x182   : > { %v722_v2 = vpack.c.bf16 %v712_v0, %v711_v59 }
 0x183   : > { %v721_v3 = vpack.c.bf16 %v710_v1, %v709_v62  ;;  %v2349_v4 = vpop.f32.mrb[12].mxu0  ;;  %2422 = vmatpush3.bf16.msra.mxu1 %v2585_v23 }
 0x184   : > { %v695_v5 = vadd.f32 %v2349_v4, %v2202_v25  ;;  %v686_v6 = vpop.f32.mrb[13].mxu0  ;;  %2423 = vmatprep.subr.bf16.mxu1 %v2586_v24 }
 0x185   : > { %v687_v7 = vadd.f32 %v2202_v25, %v686_v6  ;;  %v2350_v8 = vpop.f32.mrb[14].mxu0  ;;  %2375 = vmatprep.mubr.bf16.mxu1 %v721_v3 }
 0x186   : > { %v715_v9 = vmax.f32 %v695_v5, 0.0  ;;  %v698_v10 = vadd.f32 %v2350_v8, %v2202_v25  ;;  %v689_v11 = vpop.f32.mrb[15].mxu0  ;;  %2376 = vmatmul.mubr.bf16.gmra.mrb[8].mxu1 %v722_v2 }
 0x187   : > { %v713_v12 = vmax.f32 %v687_v7, 0.0  ;;  %v690_v13 = vadd.f32 %v2202_v25, %v689_v11  ;;  %v2587_v25 = vld [vmem:[#allocation8 + $0x28] sm:$0xff]   ;;  %2424 = vmatpush3.bf16.msra.mxu1 %v2586_v24 }
 0x188   : > { %v716_v14 = vmax.f32 %v698_v10, 0.0  ;;  %2425 = vmatprep.subr.bf16.mxu1 %v2587_v25 }
 0x189   : > { %v714_v15 = vmax.f32 %v690_v13, 0.0 }
 0x18a   : > { %v724_v16 = vpack.c.bf16 %v716_v14, %v715_v9 }
 0x18b   : > { %v723_v17 = vpack.c.bf16 %v714_v15, %v713_v12  ;;  %2426 = vmatpush3.bf16.msra.mxu1 %v2587_v25 }
 0x18c   : > { %2427 = vmatprep.subr.bf16.mxu1 %v2588_v19 }
 0x18d   : > { %2379 = vmatprep.mubr.bf16.mxu1 %v723_v17 }
 0x18e   : > { %2380 = vmatmul.mubr.bf16.gmra.mrb[12].mxu1 %v724_v16 }
 0x18f   : > { %2428 = vmatpush3.bf16.msra.mxu1 %v2588_v19 }
 0x190   : > { %2429 = vmatprep.subr.bf16.mxu1 %v2589_v20 }
 0x193   : > { %2430 = vmatpush3.bf16.msra.mxu1 %v2589_v20 }
 0x249   : > { %v2369_v27 = vpop.f32.mrb[0].mxu1 }
 0x24a   : > { %v839_v28 = vadd.f32 %v2369_v27, %v2221_v26  ;;  %v830_v29 = vpop.f32.mrb[1].mxu1 }
 0x24b   : > { %v831_v30 = vadd.f32 %v2221_v26, %v830_v29  ;;  %v2370_v31 = vpop.f32.mrb[2].mxu1 }
 0x24c   : > { %v842_v32 = vadd.f32 %v2370_v31, %v2221_v26  ;;  %v833_v33 = vpop.f32.mrb[3].mxu1  ;;  %v895_v35 = vmax.f32 %v839_v28, 0.0 }
 0x24d   : > { %v834_v34 = vadd.f32 %v2221_v26, %v833_v33  ;;  %v893_v37 = vmax.f32 %v831_v30, 0.0 }
 0x24e   : > { %v896_v36 = vmax.f32 %v842_v32, 0.0 }
 0x24f   : > { %v894_v38 = vmax.f32 %v834_v34, 0.0 }
 0x250   : > { %v910_v39 = vpack.c.bf16 %v896_v36, %v895_v35 }
 0x251   : > { %v909_v40 = vpack.c.bf16 %v894_v38, %v893_v37  ;;  %v2373_v41 = vpop.f32.mrb[4].mxu1 }
 0x252   : > { %v855_v42 = vadd.f32 %v2373_v41, %v2221_v26  ;;  %v846_v43 = vpop.f32.mrb[5].mxu1 }
 0x253   : > { %v847_v44 = vadd.f32 %v2221_v26, %v846_v43  ;;  %v2374_v45 = vpop.f32.mrb[6].mxu1  ;;  %2399 = vmatprep.mubr.bf16.mxu0 %v909_v40 }
 0x254   : > { %v858_v46 = vadd.f32 %v2374_v45, %v2221_v26  ;;  %v849_v47 = vpop.f32.mrb[7].mxu1  ;;  %2400 = vmatmul.mubr.bf16.vlgmr.msra.gmra.mrb[16].mxu0 %v910_v39  ;;  %v899_v49 = vmax.f32 %v855_v42, 0.0 }
 0x255   : > { %v850_v48 = vadd.f32 %v2221_v26, %v849_v47  ;;  %v897_v51 = vmax.f32 %v847_v44, 0.0 }
 0x256   : > { %v900_v50 = vmax.f32 %v858_v46, 0.0 }
 0x257   : > { %v898_v52 = vmax.f32 %v850_v48, 0.0 }
 0x258   : > { %v912_v53 = vpack.c.bf16 %v900_v50, %v899_v49 }
 0x259   : > { %v911_v54 = vpack.c.bf16 %v898_v52, %v897_v51  ;;  %v2377_v55 = vpop.f32.mrb[8].mxu1 }
 0x25a   : > { %v871_v56 = vadd.f32 %v2377_v55, %v2221_v26  ;;  %v862_v57 = vpop.f32.mrb[9].mxu1 }
 0x25b   : > { %v863_v58 = vadd.f32 %v2221_v26, %v862_v57  ;;  %v2378_v59 = vpop.f32.mrb[10].mxu1  ;;  %2403 = vmatprep.mubr.bf16.mxu0 %v911_v54 }
 0x25c   : > { %v874_v60 = vadd.f32 %v2378_v59, %v2221_v26  ;;  %v865_v61 = vpop.f32.mrb[11].mxu1  ;;  %2404 = vmatmul.mubr.bf16.gmra.mrb[20].mxu0 %v912_v53  ;;  %v903_v63 = vmax.f32 %v871_v56, 0.0 }
 0x25d   : > { %v866_v62 = vadd.f32 %v2221_v26, %v865_v61  ;;  %v901_v1 = vmax.f32 %v863_v58, 0.0 }
 0x25e   : > { %v904_v0 = vmax.f32 %v874_v60, 0.0 }
 0x25f   : > { %v902_v2 = vmax.f32 %v866_v62, 0.0 }
 0x260   : > { %v914_v3 = vpack.c.bf16 %v904_v0, %v903_v63 }
 0x261   : > { %v913_v4 = vpack.c.bf16 %v902_v2, %v901_v1  ;;  %v2381_v5 = vpop.f32.mrb[12].mxu1 }
 0x262   : > { %v887_v6 = vadd.f32 %v2381_v5, %v2221_v26  ;;  %v878_v7 = vpop.f32.mrb[13].mxu1 }
 0x263   : > { %v879_v8 = vadd.f32 %v2221_v26, %v878_v7  ;;  %v2382_v9 = vpop.f32.mrb[14].mxu1  ;;  %2407 = vmatprep.mubr.bf16.mxu0 %v913_v4 }
 0x264   : > { %v907_v10 = vmax.f32 %v887_v6, 0.0  ;;  %v890_v11 = vadd.f32 %v2382_v9, %v2221_v26  ;;  %v881_v12 = vpop.f32.mrb[15].mxu1  ;;  %2408 = vmatmul.mubr.bf16.gmra.mrb[24].mxu0 %v914_v3 }
 0x265   : > { %v905_v13 = vmax.f32 %v879_v8, 0.0  ;;  %v882_v14 = vadd.f32 %v2221_v26, %v881_v12 }
 0x266   : > { %v908_v15 = vmax.f32 %v890_v11, 0.0 }
 0x267   : > { %v906_v16 = vmax.f32 %v882_v14, 0.0  ;;  %v3286_v14 = vld [vmem:[#allocation9] ss:$0 sm:$0xff] }
 0x268   : > { %v916_v17 = vpack.c.bf16 %v908_v15, %v907_v10  ;;  %v1295_v15 = vlaneseq }
 0x269   : > { %v915_v18 = vpack.c.bf16 %v906_v16, %v905_v13 }
 0x26b   : > { %2411 = vmatprep.mubr.bf16.mxu0 %v915_v18 }
 0x26c   : > { %2412 = vmatmul.mubr.bf16.gmra.mrb[28].mxu0 %v916_v17 }
 0x327   : > { %v2401_v22 = vpop.f32.mrb[16].mxu0 }
 0x328   : > { %v1022_v23 = vpop.f32.mrb[17].mxu0  ;;  %v3208_v27 = vadd.f32 %v2401_v22, %v2230_v21 }
 0x329   : > { %v3206_v24 = vadd.f32 %v2230_v21, %v1022_v23  ;;  %v2402_v25 = vpop.f32.mrb[18].mxu0  ;;  %v1293_v23 = vld [vmem:[%s3650_s9] sm:$0x1] }
 0x32a   : > { %v3210_v26 = vadd.f32 %v2402_v25, %v2230_v21  ;;  %v1025_v28 = vpop.f32.mrb[19].mxu0  ;;  %v3679_v33 = vmax.f32 %v3208_v27, 0.0 }
 0x32b   : > { %v3212_v29 = vadd.f32 %v2230_v21, %v1025_v28  ;;  %v3678_v31 = vmax.f32 %v3206_v24, 0.0  ;;  %v1294_v28 = vunpack.c.l.bf16 %v1293_v23 }
 0x32c   : > { %v3677_v30 = vmax.f32 %v3210_v26, 0.0 }
 0x32d   : > { %v3676_v32 = vmax.f32 %v3212_v29, 0.0 }
 0x32e   : > { %v1102_v36 = vpack.c.bf16 %v3677_v30, %v3679_v33 }
 0x32f   : > { %v1101_v34 = vpack.c.bf16 %v3676_v32, %v3678_v31  ;;  %v2405_v35 = vpop.f32.mrb[20].mxu0 }
 0x330   : > { %v1038_v37 = vpop.f32.mrb[21].mxu0  ;;  %v3228_v40 = vadd.f32 %v2405_v35, %v2230_v21 }
 0x331   : > { %v3226_v38 = vadd.f32 %v2230_v21, %v1038_v37  ;;  %v2406_v39 = vpop.f32.mrb[22].mxu0  ;;  %2431 = vmatprep.mubr.bf16.mxu1 %v1101_v34 }
 0x332   : > { %v3230_v41 = vadd.f32 %v2406_v39, %v2230_v21  ;;  %v1041_v42 = vpop.f32.mrb[23].mxu0  ;;  %2432 = vmatmul.mubr.bf16.vlgmr.msra.gmra.mrb[16].mxu1 %v1102_v36  ;;  %v3666_v47 = vmax.f32 %v3228_v40, 0.0 }
 0x333   : > { %v3232_v43 = vadd.f32 %v2230_v21, %v1041_v42  ;;  %v3675_v45 = vmax.f32 %v3226_v38, 0.0 }
 0x334   : > { %3703 = vst [vmem:[#allocation22_spill] sm:$0xff] %v3230_v41  ;;  %v3664_v44 = vmax.f32 %v3230_v41, 0.0 }
 0x335   : > { %v3674_v46 = vmax.f32 %v3232_v43, 0.0 }
 0x336   : > { %v1104_v50 = vpack.c.bf16 %v3664_v44, %v3666_v47 }
 0x337   : > { %v1103_v48 = vpack.c.bf16 %v3674_v46, %v3675_v45  ;;  %v2409_v49 = vpop.f32.mrb[24].mxu0 }
 0x338   : > { %v1054_v51 = vpop.f32.mrb[25].mxu0  ;;  %v3248_v54 = vadd.f32 %v2409_v49, %v2230_v21 }
 0x339   : > { %v3246_v52 = vadd.f32 %v2230_v21, %v1054_v51  ;;  %v2410_v53 = vpop.f32.mrb[26].mxu0  ;;  %2435 = vmatprep.mubr.bf16.mxu1 %v1103_v48 }
 0x33a   : > { %v3250_v55 = vadd.f32 %v2410_v53, %v2230_v21  ;;  %v1057_v56 = vpop.f32.mrb[27].mxu0  ;;  %2436 = vmatmul.mubr.bf16.gmra.mrb[20].mxu1 %v1104_v50  ;;  %v3673_v61 = vmax.f32 %v3248_v54, 0.0 }
 0x33b   : > { %v3252_v57 = vadd.f32 %v2230_v21, %v1057_v56  ;;  %v3671_v59 = vmax.f32 %v3246_v52, 0.0 }
 0x33c   : > { %v3670_v58 = vmax.f32 %v3250_v55, 0.0 }
 0x33d   : > { %v3668_v60 = vmax.f32 %v3252_v57, 0.0 }
 0x33e   : > { %v1106_v0 = vpack.c.bf16 %v3670_v58, %v3673_v61 }
 0x33f   : > { %v1105_v62 = vpack.c.bf16 %v3668_v60, %v3671_v59  ;;  %v2413_v63 = vpop.f32.mrb[28].mxu0 }
 0x340   : > { %v3266_v1 = vadd.f32 %v2413_v63, %v2230_v21  ;;  %v1070_v2 = vpop.f32.mrb[29].mxu0 }
 0x341   : > { %v3268_v3 = vadd.f32 %v2230_v21, %v1070_v2  ;;  %v2414_v4 = vpop.f32.mrb[30].mxu0  ;;  %2439 = vmatprep.mubr.bf16.mxu1 %v1105_v62 }
 0x342   : > { %v3672_v5 = vmax.f32 %v3266_v1, 0.0  ;;  %v3271_v6 = vadd.f32 %v2414_v4, %v2230_v21  ;;  %v1073_v7 = vpop.f32.mrb[31].mxu0  ;;  %2440 = vmatmul.mubr.bf16.gmra.mrb[24].mxu1 %v1106_v0 }
 0x343   : > { %v3669_v8 = vmax.f32 %v3268_v3, 0.0  ;;  %v3274_v9 = vadd.f32 %v2230_v21, %v1073_v7  ;;  %v1296_v21 = vshrl.u32 %v1295_v15, 7 }
 0x344   : > { %v3665_v10 = vmax.f32 %v3271_v6, 0.0 }
 0x345   : > { %v3667_v11 = vmax.f32 %v3274_v9, 0.0  ;;  %v1297_v34 = vsub.s32 0, %v1296_v21 }
 0x346   : > { %v1108_v12 = vpack.c.bf16 %v3665_v10, %v3672_v5 }
 0x347   : > { %v1107_v13 = vpack.c.bf16 %v3667_v11, %v3669_v8  ;;  %v3295_v42 = vrot.slane %v1294_v28, %v1297_v34 }
 0x349   : > { %2443 = vmatprep.mubr.bf16.mxu1 %v1107_v13 }
 0x34a   : > { %2444 = vmatmul.mubr.bf16.gmra.mrb[28].mxu1 %v1108_v12 }
 0x405   : > { %v2433_v16 = vpop.f32.mrb[16].mxu1 }
 0x406   : > { %v1223_v17 = vadd.f32 %v2433_v16, %v3286_v14  ;;  %v1214_v18 = vpop.f32.mrb[17].mxu1 }
 0x407   : > { %v1215_v19 = vadd.f32 %v3286_v14, %v1214_v18  ;;  %v2434_v20 = vpop.f32.mrb[18].mxu1 }
 0x408   : > { %2598 = vtanh.f32 %v1223_v17  ;;  %v1217_v22 = vpop.f32.mrb[19].mxu1  ;;  %v1226_v25 = vadd.f32 %v2434_v20, %v3286_v14 }
 0x409   : > { %2600 = vtanh.f32 %v1215_v19  ;;  %v1218_v36 = vadd.f32 %v3286_v14, %v1217_v22 }
 0x40a   : > { %2602 = vtanh.f32 %v1226_v25 }
 0x40b   : > { %2604 = vtanh.f32 %v1218_v36 }
 0x40d   : > { %v2437_v35 = vpop.f32.mrb[20].mxu1 }
 0x40e   : > { %v1230_v37 = vpop.f32.mrb[21].mxu1  ;;  %v1239_v50 = vadd.f32 %v2437_v35, %v3286_v14 }
 0x40f   : > { %v2438_v39 = vpop.f32.mrb[22].mxu1  ;;  %v1231_v56 = vadd.f32 %v3286_v14, %v1230_v37 }
 0x410   : > { %v1233_v48 = vpop.f32.mrb[23].mxu1  ;;  %2606 = vtanh.f32 %v1239_v50  ;;  %v1242_v19 = vadd.f32 %v2438_v39, %v3286_v14 }
 0x411   : > { %v1234_v15 = vadd.f32 %v3286_v14, %v1233_v48 }
 0x412   : > { %v2599_v49 = vpop.eup %2598 }
 0x413   : > { %v1301_v51 = vmul.f32 %v2599_v49, %v3295_v42  ;;  %v2601_v53 = vpop.eup %2600 }
 0x414   : > { %v1299_v7 = vmul.f32 %v2601_v53, %v3295_v42  ;;  %v2603_v12 = vpop.eup %2602 }
 0x415   : > { %1319 = vadd.xlane.f32.xlu0 %v1301_v51  ;;  %v2441_v62 = vpop.f32.mrb[24].mxu1  ;;  %v1302_v17 = vmul.f32 %v2603_v12, %v3295_v42  ;;  %v2605_v18 = vpop.eup %2604 }
 0x416   : > { %v1255_v63 = vadd.f32 %v2441_v62, %v3286_v14  ;;  %v1246_v0 = vpop.f32.mrb[25].mxu1  ;;  %v1300_v25 = vmul.f32 %v2605_v18, %v3295_v42 }
 0x417   : > { %v1247_v2 = vadd.f32 %v3286_v14, %v1246_v0  ;;  %v2442_v4 = vpop.f32.mrb[26].mxu1 }
 0x418   : > { %2608 = vtanh.f32 %v1255_v63  ;;  %v1249_v13 = vpop.f32.mrb[27].mxu1  ;;  %v1258_v16 = vadd.f32 %v2442_v4, %v3286_v14 }
 0x419   : > { %2610 = vtanh.f32 %v1231_v56  ;;  %1315 = vadd.xlane.f32.xlu0 %v1299_v7  ;;  %v1250_v21 = vadd.f32 %v3286_v14, %v1249_v13 }
 0x41a   : > { %2612 = vtanh.f32 %v1247_v2  ;;  %v2607_v28 = vpop.eup %2606 }
 0x41b   : > { %2614 = vtanh.f32 %v1234_v15  ;;  %v1305_v48 = vmul.f32 %v2607_v28, %v3295_v42 }
 0x41c   : > { %2616 = vtanh.f32 %v1258_v16 }
 0x41d   : > { %v2445_v20 = vpop.f32.mrb[28].mxu1  ;;  %1321 = vadd.xlane.f32.xlu0 %v1302_v17  ;;  %2618 = vtanh.f32 %v1242_v19 }
 0x41e   : > { %v1262_v22 = vpop.f32.mrb[29].mxu1  ;;  %2620 = vtanh.f32 %v1250_v21  ;;  %v1271_v36 = vadd.f32 %v2445_v20, %v3286_v14 }
 0x41f   : > { %v2446_v23 = vpop.f32.mrb[30].mxu1  ;;  %v1263_v50 = vadd.f32 %v3286_v14, %v1262_v22 }
 0x420   : > { %v1265_v34 = vpop.f32.mrb[31].mxu1  ;;  %2622 = vtanh.f32 %v1271_v36  ;;  %v1274_v12 = vadd.f32 %v2446_v23, %v3286_v14  ;;  %v2888_v23 = vmov 0  }
 0x421   : > { %1317 = vadd.xlane.f32.xlu0 %v1300_v25  ;;  %2624 = vtanh.f32 %v1263_v50  ;;  %v1266_v63 = vadd.f32 %v3286_v14, %v1265_v34  ;;  %2554 = vset.pattern.permute.xlu1 %v2888_v23  ;;  %v3325_v25 = vld [vmem:[#allocation2] ss:$0 sm:$0xff] }
 0x422   : > { %v2609_v35 = vpop.eup %2608  ;;  %2555 = vset.pattern.permute.xlu0 %v2888_v23 }
 0x423   : > { %v2611_v37 = vpop.eup %2610  ;;  %v1309_v39 = vmul.f32 %v2609_v35, %v3295_v42  ;;  %2626 = vtanh.f32 %v1266_v63 }
 0x424   : > { %v2613_v49 = vpop.eup %2612  ;;  %v1303_v56 = vmul.f32 %v2611_v37, %v3295_v42  ;;  %2628 = vtanh.f32 %v1274_v12 }
 0x425   : > { %1335 = vadd.xlane.f32.xlu1 %v1309_v39  ;;  %1327 = vadd.xlane.f32.xlu0 %v1305_v48  ;;  %v2615_v51 = vpop.eup %2614  ;;  %v1307_v53 = vmul.f32 %v2613_v49, %v3295_v42 }
 0x426   : > { %v2617_v62 = vpop.eup %2616  ;;  %v1304_v4 = vmul.f32 %v2615_v51, %v3295_v42 }
 0x427   : > { %v2619_v0 = vpop.eup %2618  ;;  %v1310_v2 = vmul.f32 %v2617_v62, %v3295_v42 }
 0x428   : > { %v2621_v7 = vpop.eup %2620  ;;  %v1306_v15 = vmul.f32 %v2619_v0, %v3295_v42 }
 0x429   : > { %1331 = vadd.xlane.f32.xlu1 %v1307_v53  ;;  %1323 = vadd.xlane.f32.xlu0 %v1303_v56  ;;  %v1308_v13 = vmul.f32 %v2621_v7, %v3295_v42 }
 0x42a   : > { %v2623_v16 = vpop.eup %2622 }
 0x42b   : > { %v1313_v17 = vmul.f32 %v2623_v16, %v3295_v42  ;;  %v2625_v18 = vpop.eup %2624 }
 0x42c   : > { %v1311_v19 = vmul.f32 %v2625_v18, %v3295_v42 }
 0x42d   : > { %1337 = vadd.xlane.f32.xlu1 %v1310_v2  ;;  %1325 = vadd.xlane.f32.xlu0 %v1304_v4  ;;  %v2627_v20 = vpop.eup %2626 }
 0x42e   : > { %v1312_v21 = vmul.f32 %v2627_v20, %v3295_v42  ;;  %v2629_v14 = vpop.eup %2628 }
 0x42f   : > { %v1314_v22 = vmul.f32 %v2629_v14, %v3295_v42 }
 0x431   : > { %1333 = vadd.xlane.f32.xlu1 %v1308_v13  ;;  %1329 = vadd.xlane.f32.xlu0 %v1306_v15 }
 0x435   : > { %1343 = vadd.xlane.f32.xlu1 %v1313_v17 }
 0x439   : > { %1339 = vadd.xlane.f32.xlu1 %v1311_v19 }
 0x43d   : > { %1341 = vadd.xlane.f32.xlu1 %v1312_v21 }
 0x441   : > { %1345 = vadd.xlane.f32.xlu1 %v1314_v22 }
 0x4a2   : > { %v1320_v28 = vpop.xlane.xlu0 %1319 }
 0x4a3   : > { %v1356_v34 = vadd.f32 %v3325_v25, %v1320_v28 }
 0x4a5   : > { %v1385_v35 = vsel %vm1370_vm1, %v1356_v34, -inf }
 0x4a6   : > { %v1386_v36 = vrot.slane %v1385_v35, 4  ;;  %v1316_v37 = vpop.xlane.xlu0 %1315 }
 0x4a7   : > { %v1354_v39 = vadd.f32 %v3325_v25, %v1316_v37 }
 0x4a8   : > { %v1387_v48 = vmax.f32 %v1385_v35, %v1386_v36 }
 0x4a9   : > { %v1371_v49 = vsel %vm1370_vm1, %v1354_v39, -inf }
 0x4aa   : > { %v1388_v42 = vrot.slane %v1387_v48, 2  ;;  %v1372_v50 = vrot.slane %v1371_v49, 4  ;;  %v1322_v51 = vpop.xlane.xlu0 %1321 }
 0x4ab   : > { %v1357_v53 = vadd.f32 %v3325_v25, %v1322_v51 }
 0x4ac   : > { %v1389_v56 = vmax.f32 %v1387_v48, %v1388_v42  ;;  %v1373_v62 = vmax.f32 %v1371_v49, %v1372_v50 }
 0x4ad   : > { %v1392_v63 = vsel %vm1370_vm1, %v1357_v53, -inf }
 0x4ae   : > { %v1390_v0 = vrot.slane %v1389_v56, 1  ;;  %v1374_v2 = vrot.slane %v1373_v62, 2  ;;  %v1393_v4 = vrot.slane %v1392_v63, 4  ;;  %v1318_v7 = vpop.xlane.xlu0 %1317 }
 0x4af   : > { %v3334_v12 = vadd.f32 %v3325_v25, %v1318_v7 }
 0x4b0   : > { %v1391_v13 = vmax.f32 %v1389_v56, %v1390_v0  ;;  %v1375_v15 = vmax.f32 %v1373_v62, %v1374_v2  ;;  %v1394_v16 = vmax.f32 %v1392_v63, %v1393_v4 }
 0x4b1   : > { %v1378_v17 = vsel %vm1370_vm1, %v3334_v12, -inf }
 0x4b2   : > { %v1485_v18 = vsub.f32 %v1356_v34, %v1391_v13  ;;  %v1376_v19 = vrot.slane %v1375_v15, 1  ;;  %v1395_v20 = vrot.slane %v1394_v16, 2  ;;  %v1379_v21 = vrot.slane %v1378_v17, 4  ;;  %v1336_v14 = vpop.xlane.xlu1 %1335  ;;  %v1328_v22 = vpop.xlane.xlu0 %1327 }
 0x4b3   : > { %v3339_v23 = vadd.f32 %v3325_v25, %v1336_v14  ;;  %v3342_v28 = vadd.f32 %v3325_v25, %v1328_v22 }
 0x4b4   : > { %v1503_v35 = vmul.f32 1.442695, %v1485_v18  ;;  %v1377_v36 = vmax.f32 %v1375_v15, %v1376_v19  ;;  %v1396_v37 = vmax.f32 %v1394_v16, %v1395_v20  ;;  %v1380_v48 = vmax.f32 %v1378_v17, %v1379_v21 }
 0x4b5   : > { %v1441_v49 = vsel %vm1370_vm1, %v3339_v23, -inf  ;;  %v1413_v34 = vsel %vm1370_vm1, %v3342_v28, -inf }
 0x4b6   : > { %2630 = vpow2.f32 %v1503_v35  ;;  %v1483_v42 = vsub.f32 %v1354_v39, %v1377_v36  ;;  %v1397_v50 = vrot.slane %v1396_v37, 1  ;;  %v1381_v51 = vrot.slane %v1380_v48, 2  ;;  %v1332_v56 = vpop.xlane.xlu1 %1331  ;;  %v1324_v62 = vpop.xlane.xlu0 %1323 }
 0x4b7   : > { %v1442_v63 = vrot.slane %v1441_v49, 4  ;;  %v1414_v0 = vrot.slane %v1413_v34, 4  ;;  %v3349_v2 = vadd.f32 %v3325_v25, %v1332_v56  ;;  %v3352_v4 = vadd.f32 %v3325_v25, %v1324_v62 }
 0x4b8   : > { %v1499_v7 = vmul.f32 1.442695, %v1483_v42  ;;  %v1398_v13 = vmax.f32 %v1396_v37, %v1397_v50  ;;  %v1382_v15 = vmax.f32 %v1380_v48, %v1381_v51 }
 0x4b9   : > { %v1443_v16 = vmax.f32 %v1441_v49, %v1442_v63  ;;  %v1415_v17 = vmax.f32 %v1413_v34, %v1414_v0  ;;  %v1427_v39 = vsel %vm1370_vm1, %v3349_v2, -inf  ;;  %v1399_v18 = vsel %vm1370_vm1, %v3352_v4, -inf }
 0x4ba   : > { %2632 = vpow2.f32 %v1499_v7  ;;  %v1486_v19 = vsub.f32 %v1357_v53, %v1398_v13  ;;  %v1383_v20 = vrot.slane %v1382_v15, 1  ;;  %v1428_v21 = vrot.slane %v1427_v39, 4  ;;  %v1338_v14 = vpop.xlane.xlu1 %1337  ;;  %v1326_v22 = vpop.xlane.xlu0 %1325 }
 0x4bb   : > { %v1444_v35 = vrot.slane %v1443_v16, 2  ;;  %v1416_v36 = vrot.slane %v1415_v17, 2  ;;  %v1400_v56 = vrot.slane %v1399_v18, 4  ;;  %v3359_v37 = vadd.f32 %v3325_v25, %v1338_v14 }
 0x4bc   : > { %v1505_v48 = vmul.f32 1.442695, %v1486_v19  ;;  %v1384_v49 = vmax.f32 %v1382_v15, %v1383_v20  ;;  %v1429_v34 = vmax.f32 %v1427_v39, %v1428_v21  ;;  %v3362_v42 = vadd.f32 %v3325_v25, %v1326_v22 }
 0x4bd   : > { %v1445_v50 = vmax.f32 %v1443_v16, %v1444_v35  ;;  %v1417_v51 = vmax.f32 %v1415_v17, %v1416_v36  ;;  %v1401_v62 = vmax.f32 %v1399_v18, %v1400_v56  ;;  %v1448_v53 = vsel %vm1370_vm1, %v3359_v37, -inf }
 0x4be   : > { %2634 = vpow2.f32 %v1505_v48  ;;  %v1484_v63 = vsub.f32 %v3334_v12, %v1384_v49  ;;  %v1430_v0 = vrot.slane %v1429_v34, 2  ;;  %v1449_v7 = vrot.slane %v1448_v53, 4  ;;  %v1334_v20 = vpop.xlane.xlu1 %1333 }
 0x4bf   : > { %v1446_v13 = vrot.slane %v1445_v50, 1  ;;  %v1418_v14 = vrot.slane %v1417_v51, 1  ;;  %v1402_v44 = vrot.slane %v1401_v62, 2  ;;  %v1406_v15 = vsel %vm1370_vm1, %v3362_v42, -inf }
 0x4c0   : > { %v3369_v39 = vpop.eup %2630  ;;  %v1501_v19 = vmul.f32 1.442695, %v1484_v63  ;;  %v1431_v16 = vmax.f32 %v1429_v34, %v1430_v0  ;;  %v1450_v17 = vmax.f32 %v1448_v53, %v1449_v7  ;;  %v1407_v18 = vrot.slane %v1406_v15, 4 }
 0x4c1   : > { %v1447_v21 = vmax.f32 %v1445_v50, %v1446_v13  ;;  %v1419_v22 = vmax.f32 %v1417_v51, %v1418_v14  ;;  %v1403_v35 = vmax.f32 %v1401_v62, %v1402_v44  ;;  %v1545_v56 = vsel %vm1370_vm1, %v3369_v39, 0.0 }
 0x4c2   : > { %2636 = vpow2.f32 %v1501_v19  ;;  %v1432_v12 = vrot.slane %v1431_v16, 1  ;;  %v1451_v36 = vrot.slane %v1450_v17, 2  ;;  %v1408_v10 = vmax.f32 %v1406_v15, %v1407_v18  ;;  %v1344_v14 = vpop.xlane.xlu1 %1343 }
 0x4c3   : > { %v1493_v48 = vsub.f32 %v3339_v23, %v1447_v21  ;;  %v1404_v49 = vrot.slane %v1403_v35, 1  ;;  %v1489_v34 = vsub.f32 %v3342_v28, %v1419_v22  ;;  %v3378_v50 = vadd.f32 %v3325_v25, %v1334_v20  ;;  %v1330_v20 = vpop.xlane.xlu0 %1329 }
 0x4c4   : > { %v3374_v47 = vpop.eup %2632  ;;  %v1433_v53 = vmax.f32 %v1431_v16, %v1432_v12  ;;  %v1452_v63 = vmax.f32 %v1450_v17, %v1451_v36  ;;  %v1546_v0 = vrot.slane %v1545_v56, 4  ;;  %v1409_v28 = vrot.slane %v1408_v10, 2 }
 0x4c5   : > { %v1531_v44 = vsel %vm1370_vm1, %v3374_v47, 0.0  ;;  %v1519_v51 = vmul.f32 1.442695, %v1493_v48  ;;  %v1405_v62 = vmax.f32 %v1403_v35, %v1404_v49  ;;  %v1434_v19 = vsel %vm1370_vm1, %v3378_v50, -inf }
 0x4c6   : > { %v1532_v7 = vrot.slane %v1531_v44, 4  ;;  %v1491_v23 = vsub.f32 %v3349_v2, %v1433_v53  ;;  %v1453_v13 = vrot.slane %v1452_v63, 1  ;;  %v1511_v17 = vmul.f32 1.442695, %v1489_v34 }
 0x4c7   : > { %2638 = vpow2.f32 %v1519_v51  ;;  %v1487_v15 = vsub.f32 %v3352_v4, %v1405_v62  ;;  %v1410_v2 = vmax.f32 %v1408_v10, %v1409_v28  ;;  %v1547_v12 = vadd.f32 %v1546_v0, %v1545_v56  ;;  %v1340_v10 = vpop.xlane.xlu1 %1339 }
 0x4c8   : > { %v3386_v16 = vpop.eup %2634  ;;  %v1515_v18 = vmul.f32 1.442695, %v1491_v23  ;;  %v1454_v35 = vmax.f32 %v1452_v63, %v1453_v13  ;;  %v1533_v36 = vadd.f32 %v1532_v7, %v1531_v44  ;;  %v1435_v48 = vrot.slane %v1434_v19, 4 }
 0x4c9   : > { %v1552_v21 = vsel %vm1370_vm1, %v3386_v16, 0.0  ;;  %v1507_v22 = vmul.f32 1.442695, %v1487_v15  ;;  %v1411_v49 = vrot.slane %v1410_v2, 1  ;;  %v3392_v53 = vadd.f32 %v3325_v25, %v1330_v20 }
 0x4ca   : > { %2640 = vpow2.f32 %v1515_v18  ;;  %v1494_v4 = vsub.f32 %v3359_v37, %v1454_v35  ;;  %v1553_v51 = vrot.slane %v1552_v21, 4  ;;  %v1436_v62 = vmax.f32 %v1434_v19, %v1435_v48 }
 0x4cb   : > { %2642 = vpow2.f32 %v1507_v22  ;;  %v3397_v23 = vadd.f32 %v3325_v25, %v1344_v14  ;;  %v1412_v44 = vmax.f32 %v1410_v2, %v1411_v49  ;;  %v1420_v37 = vsel %vm1370_vm1, %v3392_v53, -inf  ;;  %v1342_v11 = vpop.xlane.xlu1 %1341 }
 0x4cc   : > { %v3394_v34 = vpop.eup %2636  ;;  %2644 = vpow2.f32 %v1511_v17  ;;  %v1521_v63 = vmul.f32 1.442695, %v1494_v4  ;;  %v1437_v7 = vrot.slane %v1436_v62, 2  ;;  %v1421_v13 = vrot.slane %v1420_v37, 4 }
 0x4cd   : > { %v1538_v56 = vsel %vm1370_vm1, %v3394_v34, 0.0  ;;  %v1488_v15 = vsub.f32 %v3362_v42, %v1412_v44  ;;  %v1469_v28 = vsel %vm1370_vm1, %v3397_v23, -inf  ;;  %v3407_v14 = vadd.f32 %v3325_v25, %v1340_v10 }
 0x4ce   : > { %v1539_v0 = vrot.slane %v1538_v56, 4  ;;  %2646 = vpow2.f32 %v1521_v63  ;;  %v1548_v19 = vrot.slane %v1547_v12, 2  ;;  %v1438_v17 = vmax.f32 %v1436_v62, %v1437_v7 }
 0x4cf   : > { %v1422_v18 = vmax.f32 %v1420_v37, %v1421_v13  ;;  %v1534_v22 = vrot.slane %v1533_v36, 2  ;;  %v1554_v35 = vadd.f32 %v1553_v51, %v1552_v21  ;;  %v1509_v2 = vmul.f32 1.442695, %v1488_v15  ;;  %v1346_v32 = vpop.xlane.xlu1 %1345 }
 0x4d0   : > { %v1470_v48 = vrot.slane %v1469_v28, 4  ;;  %v1439_v49 = vrot.slane %v1438_v17, 1  ;;  %v1455_v63 = vsel %vm1370_vm1, %v3407_v14, -inf  ;;  %v1540_v44 = vadd.f32 %v1539_v0, %v1538_v56 }
 0x4d1   : > { %v3409_v20 = vpop.eup %2638  ;;  %v1423_v42 = vrot.slane %v1422_v18, 2  ;;  %2648 = vpow2.f32 %v1509_v2  ;;  %v3417_v37 = vadd.f32 %v1548_v19, %v1547_v12  ;;  %v1535_v15 = vadd.f32 %v1534_v22, %v1533_v36 }
 0x4d2   : > { %v1601_v4 = vsel %vm1370_vm1, %v3409_v20, 0.0  ;;  %v1471_v10 = vmax.f32 %v1469_v28, %v1470_v48  ;;  %v1440_v21 = vmax.f32 %v1438_v17, %v1439_v49  ;;  %v1456_v58 = vrot.slane %v1455_v63, 4 }
 0x4d3   : > { %v1602_v7 = vrot.slane %v1601_v4, 4  ;;  %v1424_v51 = vmax.f32 %v1422_v18, %v1423_v42  ;;  %v1555_v56 = vrot.slane %v1554_v35, 2  ;;  %v1541_v19 = vrot.slane %v1540_v44, 2 }
 0x4d4   : > { %v3415_v62 = vpop.eup %2640  ;;  %v1472_v8 = vrot.slane %v1471_v10, 2  ;;  %v1492_v12 = vsub.f32 %v3378_v50, %v1440_v21  ;;  %v1457_v22 = vmax.f32 %v1455_v63, %v1456_v58  ;;  %v3431_v49 = vadd.f32 %v3325_v25, %v1342_v11 }
 0x4d5   : > { %v3419_v13 = vpop.eup %2642  ;;  %v1587_v60 = vsel %vm1370_vm1, %v3415_v62, 0.0  ;;  %v1425_v18 = vrot.slane %v1424_v51, 1  ;;  %v3428_v48 = vadd.f32 %v1602_v7, %v1601_v4  ;;  %v1556_v50 = vadd.f32 %v1555_v56, %v1554_v35 }
 0x4d6   : > { %v3423_v59 = vpop.eup %2644  ;;  %v1588_v0 = vrot.slane %v1587_v60, 4  ;;  %v1559_v28 = vsel %vm1370_vm1, %v3419_v13, 0.0  ;;  %v1473_v2 = vmax.f32 %v1471_v10, %v1472_v8  ;;  %v1517_v36 = vmul.f32 1.442695, %v1492_v12 }
 0x4d7   : > { %v1560_v17 = vrot.slane %v1559_v28, 4  ;;  %v1426_v46 = vmax.f32 %v1424_v51, %v1425_v18  ;;  %v3439_v21 = vsel %vm1370_vm1, %v3423_v59, 0.0  ;;  %v1542_v58 = vadd.f32 %v1541_v19, %v1540_v44 }
 0x4d8   : > { %v3433_v42 = vpop.eup %2646  ;;  %v3435_v5 = vadd.f32 %v1588_v0, %v1587_v60  ;;  %v1474_v45 = vrot.slane %v1473_v2, 1  ;;  %2650 = vpow2.f32 %v1517_v36  ;;  %v1604_v60 = vrot.slane %v3428_v48, 2 }
 0x4d9   : > { %v1561_v61 = vadd.f32 %v1560_v17, %v1559_v28  ;;  %v1608_v8 = vsel %vm1370_vm1, %v3433_v42, 0.0  ;;  %v1490_v4 = vsub.f32 %v3392_v53, %v1426_v46  ;;  %v1458_v10 = vrot.slane %v1457_v22, 2 }
 0x4da   : > { %v1475_v63 = vmax.f32 %v1473_v2, %v1474_v45  ;;  %v1462_v7 = vsel %vm1370_vm1, %v3431_v49, -inf  ;;  %v3448_v35 = vadd.f32 %v3325_v25, %v1346_v32  ;;  %v1590_v56 = vrot.slane %v3435_v5, 2 }
 0x4db   : > { %v1562_v11 = vrot.slane %v1561_v61, 2  ;;  %v3450_v51 = vpop.eup %2648  ;;  %v1609_v0 = vrot.slane %v1608_v8, 4  ;;  %v1513_v28 = vmul.f32 1.442695, %v1490_v4  ;;  %v1459_v46 = vmax.f32 %v1457_v22, %v1458_v10 }
 0x4dc   : > { %v1497_v44 = vsub.f32 %v3397_v23, %v1475_v63  ;;  %v1566_v45 = vsel %vm1370_vm1, %v3450_v51, 0.0  ;;  %v1463_v53 = vrot.slane %v1462_v7, 4  ;;  %v1476_v12 = vsel %vm1370_vm1, %v3448_v35, -inf }
 0x4dd   : > { %v1563_v19 = vadd.f32 %v1562_v11, %v1561_v61  ;;  %v1567_v17 = vrot.slane %v1566_v45, 4  ;;  %2652 = vpow2.f32 %v1513_v28  ;;  %v1460_v25 = vrot.slane %v1459_v46, 1 }
 0x4de   : > { %v1527_v32 = vmul.f32 1.442695, %v1497_v44  ;;  %v1464_v18 = vmax.f32 %v1462_v7, %v1463_v53  ;;  %v1477_v2 = vrot.slane %v1476_v12, 4  ;;  %v1550_v36 = vrot.slane %v3417_v37, 1 }
 0x4df   : > { %v1610_v4 = vadd.f32 %v1609_v0, %v1608_v8  ;;  %v1568_v30 = vadd.f32 %v1567_v17, %v1566_v45  ;;  %v1536_v23 = vrot.slane %v1535_v15, 1  ;;  %v1461_v63 = vmax.f32 %v1459_v46, %v1460_v25 }
 0x4e0   : > { %2654 = vpow2.f32 %v1527_v32  ;;  %v1465_v31 = vrot.slane %v1464_v18, 2  ;;  %v1478_v22 = vmax.f32 %v1476_v12, %v1477_v2  ;;  %v1551_v10 = vadd.f32 %v1550_v36, %v3417_v37 }
 0x4e1   : > { %v1569_v33 = vrot.slane %v1568_v30, 2  ;;  %v1537_v41 = vadd.f32 %v1536_v23, %v1535_v15  ;;  %v1557_v61 = vrot.slane %v1556_v50, 1  ;;  %v1543_v11 = vrot.slane %v1542_v58, 1 }
 0x4e2   : > { %v3460_v28 = vpop.eup %2650  ;;  %v1495_v7 = vsub.f32 %v3407_v14, %v1461_v63  ;;  %v1466_v44 = vmax.f32 %v1464_v18, %v1465_v31  ;;  %v1479_v53 = vrot.slane %v1478_v22, 2  ;;  %2656 = vrcp.f32 %v1551_v10 }
 0x4e3   : > { %v1570_v8 = vadd.f32 %v1569_v33, %v1568_v30  ;;  %v1594_v0 = vsel %vm1370_vm1, %v3460_v28, 0.0  ;;  %2658 = vrcp.f32 %v1537_v41  ;;  %v1558_v45 = vadd.f32 %v1557_v61, %v1556_v50 }
 0x4e4   : > { %v1595_v46 = vrot.slane %v1594_v0, 4  ;;  %v1523_v12 = vmul.f32 1.442695, %v1495_v7  ;;  %v1467_v37 = vrot.slane %v1466_v44, 1  ;;  %v1480_v17 = vmax.f32 %v1478_v22, %v1479_v53 }
 0x4e5   : > { %2660 = vrcp.f32 %v1558_v45  ;;  %v1544_v15 = vadd.f32 %v1543_v11, %v1542_v58  ;;  %v1564_v32 = vrot.slane %v1563_v19, 1  ;;  %v1571_v25 = vrot.slane %v1570_v8, 1 }
 0x4e6   : > { %v1605_v2 = vadd.f32 %v1604_v60, %v3428_v48  ;;  %2662 = vpow2.f32 %v1523_v12  ;;  %v1468_v31 = vmax.f32 %v1466_v44, %v1467_v37  ;;  %v1481_v14 = vrot.slane %v1480_v17, 1 }
 0x4e7   : > { %v3466_v18 = vpop.eup %2652  ;;  %v1574_v30 = vrot.slane %v3439_v21, 4  ;;  %2664 = vrcp.f32 %v1544_v15  ;;  %v1565_v33 = vadd.f32 %v1564_v32, %v1563_v19  ;;  %v1572_v41 = vadd.f32 %v1571_v25, %v1570_v8 }
 0x4e8   : > { %v1596_v50 = vadd.f32 %v1595_v46, %v1594_v0  ;;  %v1496_v36 = vsub.f32 %v3431_v49, %v1468_v31  ;;  %v1482_v23 = vmax.f32 %v1480_v17, %v1481_v14  ;;  %v1591_v58 = vadd.f32 %v1590_v56, %v3435_v5 }
 0x4e9   : > { %v1611_v22 = vrot.slane %v1610_v4, 2  ;;  %v1580_v48 = vsel %vm1370_vm1, %v3466_v18, 0.0  ;;  %2666 = vrcp.f32 %v1565_v33  ;;  %v1606_v61 = vrot.slane %v1605_v2, 1 }
 0x4ea   : > { %v3470_v63 = vpop.eup %2654  ;;  %v1525_v10 = vmul.f32 1.442695, %v1496_v36  ;;  %v1498_v19 = vsub.f32 %v3448_v35, %v1482_v23  ;;  %v1575_v11 = vadd.f32 %v1574_v30, %v3439_v21  ;;  %2668 = vrcp.f32 %v1572_v41 }
 0x4eb   : > { %v1629_v60 = vsel %vm1370_vm1, %v3470_v63, 0.0  ;;  %v1597_v44 = vrot.slane %v1596_v50, 2  ;;  %v1581_v53 = vrot.slane %v1580_v48, 4  ;;  %v1612_v8 = vadd.f32 %v1611_v22, %v1610_v4 }
 0x4ec   : > { %v1630_v49 = vrot.slane %v1629_v60, 4  ;;  %v2657_v7 = vpop.eup %2656  ;;  %2670 = vpow2.f32 %v1525_v10  ;;  %v1529_v5 = vmul.f32 1.442695, %v1498_v19  ;;  %v1592_v46 = vrot.slane %v1591_v58, 1 }
 0x4ed   : > { %v2659_v56 = vpop.eup %2658  ;;  %v1661_v45 = vmul.f32 %v2657_v7, %v3369_v39  ;;  %v1607_v35 = vadd.f32 %v1606_v61, %v1605_v2  ;;  %v1576_v17 = vrot.slane %v1575_v11, 2  ;;  %v1598_v25 = vadd.f32 %v1597_v44, %v1596_v50 }
 0x4ee   : > { %v1631_v0 = vadd.f32 %v1630_v49, %v1629_v60  ;;  %2672 = vpow2.f32 %v1529_v5  ;;  %v1659_v12 = vmul.f32 %v2659_v56, %v3374_v47  ;;  %v1582_v31 = vadd.f32 %v1581_v53, %v1580_v48 }
 0x4ef   : > { %v2661_v37 = vpop.eup %2660  ;;  %v1677_v15 = vmul.f32 0.35355338, %v1661_v45  ;;  %v1593_v41 = vadd.f32 %v1592_v46, %v1591_v58  ;;  %v1613_v47 = vrot.slane %v1612_v8, 1  ;;  %2674 = vrcp.f32 %v1607_v35 }
 0x4f0   : > { %v1632_v21 = vrot.slane %v1631_v0, 2  ;;  %v3481_v32 = vpop.eup %2662  ;;  %v1675_v14 = vmul.f32 0.35355338, %v1659_v12  ;;  %v1662_v30 = vmul.f32 %v2661_v37, %v3386_v16  ;;  %v1599_v60 = vrot.slane %v1598_v25, 1 }
 0x4f1   : > { %v2665_v4 = vpop.eup %2664  ;;  %v1615_v39 = vsel %vm1370_vm1, %v3481_v32, 0.0  ;;  %1703 = vperm.xlu1 %2554, %v1677_v15   ;;  %v1583_v16 = vrot.slane %v1582_v31, 2  ;;  %v1577_v58 = vadd.f32 %v1576_v17, %v1575_v11  ;;  %2676 = vrcp.f32 %v1593_v41 }
 0x4f2   : > { %v1633_v33 = vadd.f32 %v1632_v21, %v1631_v0  ;;  %v1616_v2 = vrot.slane %v1615_v39, 4  ;;  %1693 = vperm.xlu0 %2555, %v1675_v14   ;;  %v1678_v36 = vmul.f32 0.35355338, %v1662_v30  ;;  %v1660_v23 = vmul.f32 %v2665_v4, %v3394_v34 }
 0x4f3   : > { %v2667_v22 = vpop.eup %2666  ;;  %v1614_v53 = vadd.f32 %v1613_v47, %v1612_v8  ;;  %v1600_v45 = vadd.f32 %v1599_v60, %v1598_v25  ;;  %v1584_v46 = vadd.f32 %v1583_v16, %v1582_v31  ;;  %v1578_v8 = vrot.slane %v1577_v58, 1 }
 0x4f4   : > { %v1634_v50 = vrot.slane %v1633_v33, 1  ;;  %v1617_v48 = vadd.f32 %v1616_v2, %v1615_v39  ;;  %v2669_v10 = vpop.eup %2668  ;;  %v1676_v19 = vmul.f32 0.35355338, %v1660_v23  ;;  %v1663_v61 = vmul.f32 %v2667_v22, %v3419_v13 }
 0x4f5   : > { %1708 = vperm.xlu1 %2554, %v1678_v36   ;;  %v1664_v11 = vmul.f32 %v2669_v10, %v3450_v51  ;;  %v1585_v25 = vrot.slane %v1584_v46, 1  ;;  %v1579_v39 = vadd.f32 %v1578_v8, %v1577_v58 }
 0x4f6   : > { %v1635_v49 = vadd.f32 %v1634_v50, %v1633_v33  ;;  %v3488_v7 = vpop.eup %2670  ;;  %v1618_v44 = vrot.slane %v1617_v48, 2  ;;  %v1679_v12 = vmul.f32 0.35355338, %v1663_v61 }
 0x4f7   : > { %v1622_v34 = vsel %vm1370_vm1, %v3488_v7, 0.0  ;;  %v1680_v30 = vmul.f32 0.35355338, %v1664_v11  ;;  %v1586_v23 = vadd.f32 %v1585_v25, %v1584_v46  ;;  %v3704_v25 = vmax.f32 %v3208_v27, 0.0 }
 0x4f8   : > { %2678 = vrcp.f32 %v1635_v49  ;;  %v3492_v5 = vpop.eup %2672  ;;  %v1619_v56 = vadd.f32 %v1618_v44, %v1617_v48  ;;  %v1623_v0 = vrot.slane %v1622_v34, 4 }
 0x4f9   : > { %v1636_v13 = vsel %vm1370_vm1, %v3492_v5, 0.0  ;;  %1698 = vperm.xlu1 %2554, %v1676_v19   ;;  %2680 = vrcp.f32 %v1614_v53  ;;  %v2675_v21 = vpop.eup %2674 }
 0x4fa   : > { %v1624_v35 = vadd.f32 %v1623_v0, %v1622_v34  ;;  %v1637_v37 = vrot.slane %v1636_v13, 4  ;;  %v1620_v17 = vrot.slane %v1619_v56, 1  ;;  %2682 = vrcp.f32 %v1600_v45 }
 0x4fb   : > { %v1669_v41 = vmul.f32 %v2675_v21, %v3409_v20  ;;  %v2677_v51 = vpop.eup %2676  ;;  %v2594_v21 = vld [vmem:[%s3652_s11 + $0x20] sm:$0xff]  }
 0x4fc   : > { %v1625_v15 = vrot.slane %v1624_v35, 2  ;;  %v1638_v14 = vadd.f32 %v1637_v37, %v1636_v13  ;;  %v1621_v4 = vadd.f32 %v1620_v17, %v1619_v56  ;;  %v1667_v10 = vmul.f32 %v2677_v51, %v3415_v62 }
 0x4fd   : > { %1713 = vperm.xlu1 %2554, %v1679_v12   ;;  %v1685_v60 = vmul.f32 0.35355338, %v1669_v41  ;;  %v2889_v17 = vmov 0.0  }
 0x4fe   : > { %v1626_v31 = vadd.f32 %v1625_v15, %v1624_v35  ;;  %v1639_v33 = vrot.slane %v1638_v14, 2  ;;  %2684 = vrcp.f32 %v1621_v4  ;;  %v1683_v20 = vmul.f32 0.35355338, %v1667_v10  ;;  %2447 = vmatprep.subr.bf16.mxu0 %v2889_v17  ;;  %v2595_v15 = vld [vmem:[%s3652_s11 + $0x28] sm:$0xff]   ;;  %2463 = vmatprep.mubr.msk.bf16.mxu0 %vm2890_vm2, %v2889_v17 }
 0x4ff   : > { %2686 = vrcp.f32 %v1579_v39  ;;  %v3705_v39 = vmax.f32 %v3206_v24, 0.0  ;;  %v3708_v24 = vmax.f32 %v3226_v38, 0.0 }
 0x500   : > { %v1640_v47 = vadd.f32 %v1639_v33, %v1638_v14  ;;  %v1627_v2 = vrot.slane %v1626_v31, 1  ;;  %v2596_v14 = vld [vmem:[%s3652_s11 + $0x30] sm:$0xff]  }
 0x501   : > { %1718 = vperm.xlu1 %2554, %v1680_v30   ;;  %v2597_v30 = vld [vmem:[%s3652_s11 + $0x38] sm:$0xff]  }
 0x502   : > { %v2679_v36 = vpop.eup %2678  ;;  %v1628_v50 = vadd.f32 %v1627_v2, %v1626_v31  ;;  %v1641_v48 = vrot.slane %v1640_v47, 1  ;;  %v3706_v2 = vmax.f32 %v3210_v26, 0.0 }
 0x503   : > { %v1673_v22 = vmul.f32 %v2679_v36, %v3470_v63  ;;  %v2681_v16 = vpop.eup %2680 }
 0x504   : > { %2688 = vrcp.f32 %v1628_v50  ;;  %v1642_v61 = vadd.f32 %v1641_v48, %v1640_v47  ;;  %v1670_v49 = vmul.f32 %v2681_v16, %v3433_v42  ;;  %v2683_v58 = vpop.eup %2682 }
 0x505   : > { %v1689_v19 = vmul.f32 0.35355338, %v1673_v22  ;;  %1743 = vperm.xlu1 %2554, %v1685_v60   ;;  %2690 = vrcp.f32 %v1586_v23  ;;  %v1668_v34 = vmul.f32 %v2683_v58, %v3460_v28  ;;  %v3707_v60 = vmax.f32 %v3212_v29, 0.0 }
 0x506   : > { %2692 = vrcp.f32 %v1642_v61  ;;  %v1686_v53 = vmul.f32 0.35355338, %v1670_v49 }
 0x507   : > { %1763 = vperm.xlu0 %2555, %v1689_v19   ;;  %v1684_v13 = vmul.f32 0.35355338, %v1668_v34 }
 0x508   : > { %v2685_v44 = vpop.eup %2684 }
 0x509   : > { %1733 = vperm.xlu1 %2554, %v1683_v20   ;;  %v1671_v63 = vmul.f32 %v2685_v44, %v3481_v32  ;;  %v2687_v62 = vpop.eup %2686 }
 0x50a   : > { %v1665_v12 = vmul.f32 %v2687_v62, %v3423_v59  ;;  %v2591_v59 = vld [vmem:[%s3652_s11 + $0x8] sm:$0xff]  }
 0x50b   : > { %v1687_v56 = vmul.f32 0.35355338, %v1671_v63 }
 0x50c   : > { %v1681_v37 = vmul.f32 0.35355338, %v1665_v12 }
 0x50d   : > { %1748 = vperm.xlu1 %2554, %v1686_v53   ;;  %1753 = vperm.xlu0 %2555, %v1687_v56  }
 0x50e   : > { %v2689_v0 = vpop.eup %2688 }
 0x50f   : > { %v2691_v45 = vpop.eup %2690  ;;  %v1672_v46 = vmul.f32 %v2689_v0, %v3488_v7  ;;  %v2590_v7 = vld [vmem:[%s3652_s11] sm:$0xff]  }
 0x510   : > { %v2693_v42 = vpop.eup %2692  ;;  %v1666_v28 = vmul.f32 %v2691_v45, %v3466_v18  ;;  %2448 = vmatpush3.bf16.msra.mxu0 %v2590_v7  ;;  %v2592_v18 = vld [vmem:[%s3652_s11 + $0x10] sm:$0xff]  }
 0x511   : > { %v1688_v11 = vmul.f32 0.35355338, %v1672_v46  ;;  %1738 = vperm.xlu1 %2554, %v1684_v13   ;;  %v1674_v35 = vmul.f32 %v2693_v42, %v3492_v5  ;;  %2449 = vmatprep.subr.bf16.mxu0 %v2889_v17  ;;  %v2593_v5 = vld [vmem:[%s3652_s11 + $0x18] sm:$0xff]   ;;  %v3709_v46 = vmax.f32 %v3232_v43, 0.0  ;;  %v3712_v43 = vmax.f32 %v3246_v52, 0.0 }
 0x512   : > { %v1682_v8 = vmul.f32 0.35355338, %v1666_v28  ;;  %v3714_v52 = vmax.f32 %v3268_v3, 0.0 }
 0x513   : > { %1758 = vperm.xlu0 %2555, %v1688_v11   ;;  %v1690_v32 = vmul.f32 0.35355338, %v1674_v35  ;;  %v3710_v11 = vmax.f32 %v3248_v54, 0.0 }
 0x514   : > { %2450 = vmatpush3.bf16.msra.mxu0 %v2591_v59 }
 0x515   : > { %1723 = vperm.xlu1 %2554, %v1681_v37   ;;  %2451 = vmatprep.subr.bf16.mxu0 %v2889_v17  ;;  %v3711_v37 = vmax.f32 %v3266_v1, 0.0 }
 0x517   : > { %1768 = vperm.xlu0 %2555, %v1690_v32  }
 0x518   : > { %2452 = vmatpush3.bf16.msra.mxu0 %v2592_v18 }
 0x519   : > { %1728 = vperm.xlu1 %2554, %v1682_v8   ;;  %2453 = vmatprep.subr.bf16.mxu0 %v2889_v17 }
 0x51c   : > { %2454 = vmatpush3.bf16.msra.mxu0 %v2593_v5 }
 0x51d   : > { %2455 = vmatprep.subr.bf16.mxu0 %v2889_v17 }
 0x520   : > { %2456 = vmatpush3.bf16.msra.mxu0 %v2594_v21 }
 0x521   : > { %2457 = vmatprep.subr.bf16.mxu0 %v2889_v17 }
 0x524   : > { %2458 = vmatpush3.bf16.msra.mxu0 %v2595_v15 }
 0x525   : > { %2459 = vmatprep.subr.bf16.mxu0 %v2889_v17 }
 0x528   : > { %2460 = vmatpush3.bf16.msra.mxu0 %v2596_v14 }
 0x529   : > { %2461 = vmatprep.subr.bf16.mxu0 %v2889_v17 }
 0x52c   : > { %2462 = vmatpush3.bf16.msra.mxu0 %v2597_v30 }
 0x570   : > { %v1704_v4 = vpop.permute.xlu1 %1703 }
 0x571   : > { %v1773_v31 = vmul.f32 %v1704_v4, %v3704_v25  ;;  %v1694_v33 = vpop.permute.xlu0 %1693 }
 0x572   : > { %v1771_v41 = vmul.f32 %v1694_v33, %v3705_v39 }
 0x573   : > { %v1799_v47 = vrot.slane %v1773_v31, 4 }
 0x574   : > { %v1709_v51 = vpop.permute.xlu1 %1708  ;;  %v1787_v23 = vrot.slane %v1771_v41, 4 }
 0x575   : > { %v1774_v36 = vmul.f32 %v1709_v51, %v3706_v2  ;;  %v1800_v48 = vadd.f32 %v1799_v47, %v1773_v31 }
 0x576   : > { %v1788_v16 = vadd.f32 %v1787_v23, %v1771_v41 }
 0x577   : > { %v1805_v22 = vrot.slane %v1774_v36, 4  ;;  %v1801_v20 = vrot.slane %v1800_v48, 2 }
 0x578   : > { %v1699_v50 = vpop.permute.xlu1 %1698  ;;  %v1789_v44 = vrot.slane %v1788_v16, 2 }
 0x579   : > { %v1772_v10 = vmul.f32 %v1699_v50, %v3707_v60  ;;  %v1806_v19 = vadd.f32 %v1805_v22, %v1774_v36  ;;  %v1802_v62 = vadd.f32 %v1801_v20, %v1800_v48  ;;  %v3713_v22 = vmax.f32 %v3250_v55, 0.0 }
 0x57a   : > { %v1790_v56 = vadd.f32 %v1789_v44, %v1788_v16 }
 0x57b   : > { %v1793_v27 = vrot.slane %v1772_v10, 4  ;;  %v1807_v63 = vrot.slane %v1806_v19, 2  ;;  %v1803_v42 = vrot.slane %v1802_v62, 1 }
 0x57c   : > { %v1714_v61 = vpop.permute.xlu1 %1713  ;;  %v1791_v32 = vrot.slane %v1790_v56, 1 }
 0x57d   : > { %v1794_v49 = vadd.f32 %v1793_v27, %v1772_v10  ;;  %v1775_v58 = vmul.f32 %v1714_v61, %v3708_v24  ;;  %v1808_v0 = vadd.f32 %v1807_v63, %v1806_v19  ;;  %v1804_v21 = vadd.f32 %v1803_v42, %v1802_v62 }
 0x57e   : > { %v1792_v30 = vadd.f32 %v1791_v32, %v1790_v56  ;;  %v3715_v63 = vmax.f32 %v3252_v57, 0.0 }
 0x57f   : > { %v1795_v26 = vrot.slane %v1794_v49, 2  ;;  %v1811_v53 = vrot.slane %v1775_v58, 4  ;;  %v1809_v8 = vrot.slane %v1808_v0, 1  ;;  %v1885_v41 = vpack.c.bf16 %v1804_v21, %v1804_v21 }
 0x580   : > { %v1719_v34 = vpop.permute.xlu1 %1718  ;;  %v1883_v36 = vpack.c.bf16 %v1792_v30, %v1792_v30 }
 0x581   : > { %v1796_v45 = vadd.f32 %v1795_v26, %v1794_v49  ;;  %v1812_v29 = vadd.f32 %v1811_v53, %v1775_v58  ;;  %v1776_v13 = vmul.f32 %v1719_v34, %v3709_v46  ;;  %v1810_v54 = vadd.f32 %v1809_v8, %v1808_v0 }
 0x582   : > { %v3553_v24 = vunpack.c.l.b16 %v1885_v41  ;;  %v1938_v26 = vunpack.c.l.b16 %v1883_v36 }
 0x583   : > { %v1797_v7 = vrot.slane %v1796_v45, 1  ;;  %v1813_v59 = vrot.slane %v1812_v29, 2  ;;  %v1817_v18 = vrot.slane %v1776_v13, 4  ;;  %v1886_v60 = vpack.c.bf16 %v1810_v54, %v1810_v54 }
 0x584   : > { %v1744_v12 = vpop.permute.xlu1 %1743 }
 0x585   : > { %v1781_v35 = vmul.f32 %v1744_v12, %v3710_v11  ;;  %v1798_v25 = vadd.f32 %v1797_v7, %v1796_v45  ;;  %v1814_v33 = vadd.f32 %v1813_v59, %v1812_v29  ;;  %v1818_v39 = vadd.f32 %v1817_v18, %v1776_v13 }
 0x586   : > { %v1764_v38 = vpop.permute.xlu0 %1763  ;;  %v3557_v56 = vunpack.c.l.b16 %v1886_v60  ;;  %v3716_v29 = vmax.f32 %v3274_v9, 0.0 }
 0x587   : > { %v1785_v28 = vmul.f32 %v1764_v38, %v3711_v37  ;;  %v1847_v17 = vrot.slane %v1781_v35, 4  ;;  %v1884_v10 = vpack.c.bf16 %v1798_v25, %v1798_v25  ;;  %v1815_v19 = vrot.slane %v1814_v33, 1 }
 0x588   : > { %v1734_v5 = vpop.permute.xlu1 %1733  ;;  %v1819_v27 = vrot.slane %v1818_v39, 2 }
 0x589   : > { %v1779_v15 = vmul.f32 %v1734_v5, %v3712_v43  ;;  %v1871_v14 = vrot.slane %v1785_v28, 4  ;;  %v1848_v4 = vadd.f32 %v1847_v17, %v1781_v35  ;;  %v1939_v0 = vunpack.c.l.b16 %v1884_v10 }
 0x58a   : > { %v3561_v13 = vadd.f32 %v1815_v19, %v1814_v33  ;;  %v1820_v12 = vadd.f32 %v1819_v27, %v1818_v39  ;;  %v3717_v17 = vmax.f32 %v3228_v40, 0.0  ;;  %v3718_v43 = vmax.f32 %v3271_v6, 0.0 }
 0x58b   : > { %v1835_v31 = vrot.slane %v1779_v15, 4  ;;  %v1872_v47 = vadd.f32 %v1871_v14, %v1785_v28  ;;  %v1849_v23 = vrot.slane %v1848_v4, 2  ;;  %v3566_v9 = vsel %vm1954_vm3, %v1939_v0, %v1938_v26 }
 0x58c   : > { %v1749_v1 = vpop.permute.xlu1 %1748  ;;  %v1754_v2 = vpop.permute.xlu0 %1753  ;;  %v1821_v14 = vrot.slane %v1820_v12, 1 }
 0x58d   : > { %v1836_v51 = vadd.f32 %v1835_v31, %v1779_v15  ;;  %v1782_v50 = vmul.f32 %v1749_v1, %v3713_v22  ;;  %v1783_v48 = vmul.f32 %v1754_v2, %v3714_v52  ;;  %v1873_v44 = vrot.slane %v1872_v47, 2 }
 0x58e   : > { %v1850_v53 = vadd.f32 %v1849_v23, %v1848_v4  ;;  %v1822_v52 = vadd.f32 %v1821_v14, %v1820_v12 }
 0x58f   : > { %v1837_v16 = vrot.slane %v1836_v51, 2  ;;  %v1853_v61 = vrot.slane %v1782_v50, 4  ;;  %v1859_v20 = vrot.slane %v1783_v48, 4  ;;  %v1874_v38 = vadd.f32 %v1873_v44, %v1872_v47  ;;  %v3719_v47 = vld [vmem:[#allocation22_spill] sm:$0xff] }
 0x590   : > { %v1739_v49 = vpop.permute.xlu1 %1738  ;;  %v1851_v28 = vrot.slane %v1850_v53, 1  ;;  %v3720_v2 = vmax.f32 %v3719_v47, 0.0 }
 0x591   : > { %v1838_v58 = vadd.f32 %v1837_v16, %v1836_v51  ;;  %v1780_v55 = vmul.f32 %v1739_v49, %v3715_v63  ;;  %v1854_v3 = vadd.f32 %v1853_v61, %v1782_v50  ;;  %v1860_v34 = vadd.f32 %v1859_v20, %v1783_v48 }
 0x592   : > { %v1759_v62 = vpop.permute.xlu0 %1758  ;;  %v1852_v40 = vadd.f32 %v1851_v28, %v1850_v53  ;;  %v1875_v41 = vrot.slane %v1874_v38, 1 }
 0x593   : > { %v1841_v45 = vrot.slane %v1780_v55, 4  ;;  %v1784_v46 = vmul.f32 %v1759_v62, %v3716_v29  ;;  %v1855_v42 = vrot.slane %v1854_v3, 2  ;;  %v1861_v11 = vrot.slane %v1860_v34, 2 }
 0x594   : > { %v1724_v35 = vpop.permute.xlu1 %1723  ;;  %v1839_v57 = vrot.slane %v1838_v58, 1  ;;  %v1893_v20 = vpack.c.bf16 %v1852_v40, %v1852_v40  ;;  %v1876_v49 = vadd.f32 %v1875_v41, %v1874_v38 }
 0x595   : > { %v1842_v32 = vadd.f32 %v1841_v45, %v1780_v55  ;;  %v1865_v37 = vrot.slane %v1784_v46, 4  ;;  %v1856_v8 = vadd.f32 %v1855_v42, %v1854_v3  ;;  %v1862_v7 = vadd.f32 %v1861_v11, %v1860_v34 }
 0x596   : > { %v1777_v59 = vmul.f32 %v1724_v35, %v3717_v17  ;;  %v1769_v18 = vpop.permute.xlu0 %1768  ;;  %v1840_v31 = vadd.f32 %v1839_v57, %v1838_v58  ;;  %v1887_v3 = vpack.c.bf16 %v3561_v13, %v3561_v13  ;;  %v1888_v42 = vpack.c.bf16 %v1822_v52, %v1822_v52 }
 0x597   : > { %v1843_v5 = vrot.slane %v1842_v32, 2  ;;  %v1866_v21 = vadd.f32 %v1865_v37, %v1784_v46  ;;  %v1786_v15 = vmul.f32 %v1769_v18, %v3718_v43  ;;  %v1857_v30 = vrot.slane %v1856_v8, 1 }
 0x598   : > { %v1863_v4 = vrot.slane %v1862_v7, 1  ;;  %v1823_v54 = vrot.slane %v1777_v59, 4  ;;  %v1729_v25 = vpop.permute.xlu1 %1728  ;;  %v1891_v16 = vpack.c.bf16 %v1840_v31, %v1840_v31  ;;  %v1948_v11 = vunpack.c.l.b16 %v1893_v20 }
 0x599   : > { %v1844_v33 = vadd.f32 %v1843_v5, %v1842_v32  ;;  %v1867_v39 = vrot.slane %v1866_v21, 2  ;;  %v1877_v1 = vrot.slane %v1786_v15, 4  ;;  %v1778_v36 = vmul.f32 %v1729_v25, %v3720_v2 }
 0x59a   : > { %v1824_v51 = vadd.f32 %v1823_v54, %v1777_v59  ;;  %v1858_v23 = vadd.f32 %v1857_v30, %v1856_v8  ;;  %v1864_v48 = vadd.f32 %v1863_v4, %v1862_v7  ;;  %v1946_v45 = vunpack.c.l.b16 %v1891_v16 }
 0x59b   : > { %v1845_v22 = vrot.slane %v1844_v33, 1  ;;  %v1868_v6 = vadd.f32 %v1867_v39, %v1866_v21  ;;  %v1878_v50 = vadd.f32 %v1877_v1, %v1786_v15  ;;  %v1829_v10 = vrot.slane %v1778_v36, 4 }
 0x59c   : > { %v1825_v60 = vrot.slane %v1824_v51, 2  ;;  %v1894_v63 = vpack.c.bf16 %v1858_v23, %v1858_v23  ;;  %v1895_v34 = vpack.c.bf16 %v1864_v48, %v1864_v48  ;;  %v1897_v38 = vpack.c.bf16 %v1876_v49, %v1876_v49 }
 0x59d   : > { %v1846_v19 = vadd.f32 %v1845_v22, %v1844_v33  ;;  %v1869_v27 = vrot.slane %v1868_v6, 1  ;;  %v1879_v61 = vrot.slane %v1878_v50, 2  ;;  %v1830_v44 = vadd.f32 %v1829_v10, %v1778_v36 }
 0x59e   : > { %v1826_v58 = vadd.f32 %v1825_v60, %v1824_v51  ;;  %v1949_v32 = vunpack.c.l.b16 %v1894_v63  ;;  %v1950_v8 = vunpack.c.l.b16 %v1895_v34  ;;  %v1957_v59 = vsel %vm1956_vm4, %v3553_v24, %v3566_v9 }
 0x59f   : > { %v1892_v55 = vpack.c.bf16 %v1846_v19, %v1846_v19  ;;  %v1870_v26 = vadd.f32 %v1869_v27, %v1868_v6  ;;  %v1880_v53 = vadd.f32 %v1879_v61, %v1878_v50  ;;  %v1831_v0 = vrot.slane %v1830_v44, 2 }
 0x5a0   : > { %v1827_v62 = vrot.slane %v1826_v58, 1  ;;  %v1942_v18 = vunpack.c.l.b16 %v1887_v3  ;;  %v1943_v43 = vunpack.c.l.b16 %v1888_v42  ;;  %v1952_v4 = vunpack.c.l.b16 %v1897_v38 }
 0x5a1   : > { %v1947_v29 = vunpack.c.l.b16 %v1892_v55  ;;  %v1896_v46 = vpack.c.bf16 %v1870_v26, %v1870_v26  ;;  %v1881_v12 = vrot.slane %v1880_v53, 1  ;;  %v1832_v57 = vadd.f32 %v1831_v0, %v1830_v44 }
 0x5a2   : > { %v1828_v35 = vadd.f32 %v1827_v62, %v1826_v58  ;;  %v1959_v31 = vsel %vm1958_vm5, %v3557_v56, %v1957_v59  ;;  %v2249_v56 = vld [vmem:[%s3653_s12] ss:$0 sm:$0xff] }
 0x5a3   : > { %v1968_v37 = vsel %vm1954_vm3, %v1947_v29, %v1946_v45  ;;  %v1882_v28 = vadd.f32 %v1881_v12, %v1880_v53  ;;  %v1833_v17 = vrot.slane %v1832_v57, 1  ;;  %v1951_v21 = vunpack.c.l.b16 %v1896_v46 }
 0x5a4   : > { %v1969_v7 = vsel %vm1956_vm4, %v1948_v11, %v1968_v37  ;;  %v1889_v13 = vpack.c.bf16 %v1828_v35, %v1828_v35  ;;  %v1961_v24 = vsel %vm1960_vm6, %v1942_v18, %v1959_v31 }
 0x5a5   : > { %v1970_v5 = vsel %vm1958_vm5, %v1949_v32, %v1969_v7  ;;  %v1898_v14 = vpack.c.bf16 %v1882_v28, %v1882_v28  ;;  %v1834_v30 = vadd.f32 %v1833_v17, %v1832_v57  ;;  %v1963_v39 = vsel %vm1962_vm7, %v1943_v43, %v1961_v24 }
 0x5a6   : > { %v1971_v15 = vsel %vm1960_vm6, %v1950_v8, %v1970_v5  ;;  %v1944_v25 = vunpack.c.l.b16 %v1889_v13 }
 0x5a7   : > { %v1972_v54 = vsel %vm1962_vm7, %v1951_v21, %v1971_v15  ;;  %v1890_v33 = vpack.c.bf16 %v1834_v30, %v1834_v30  ;;  %v1953_v1 = vunpack.c.l.b16 %v1898_v14 }
 0x5a8   : > { %v1973_v9 = vsel %vm1964_vm8, %v1952_v4, %v1972_v54  ;;  %v1965_v41 = vsel %vm1964_vm8, %v1944_v25, %v1963_v39 }
 0x5a9   : > { %v1945_v40 = vunpack.c.l.b16 %v1890_v33  ;;  %v1974_v51 = vsel %vm1966_vm9, %v1953_v1, %v1973_v9 }
 0x5ab   : > { %v1967_v47 = vsel %vm1966_vm9, %v1945_v40, %v1965_v41 }
 0x5ac   : > { %v1975_v2 = vpack.c.b16 %v1974_v51, %v1967_v47 }
 0x5ae   : > { %2464 = vmatmul.mubr.bf16.vlgmr.msra.gmra.mrb[32].mxu0 %v1975_v2 }
 0x681   : > { %v2059_v36 = vpop.f32.mrb[32].mxu0 }
 0x682   : > { %v2060_v23 = vadd.f32 %v2249_v56, %v2059_v36  ;;  %v2465_v22 = vpop.f32.mrb[33].mxu0 }
 0x683   : > { %v2062_v6 = vpop.f32.mrb[34].mxu0 }
 0x684   : > { %v2066_v50 = vmax.f32 %v2060_v23, 0.0  ;;  %v2063_v52 = vadd.f32 %v2249_v56, %v2062_v6  ;;  %v2466_v48 = vpop.f32.mrb[35].mxu0 }
 0x686   : > { %2068 = vst [vmem:[%s491_s15] sm:$0xff] %v2066_v50  ;;  %v2067_v60 = vmax.f32 %v2063_v52, 0.0 }
 0x688   : > { %2069 = vst [vmem:[%s491_s15 + $0x8] sm:$0xff] %v2067_v60 }
 0x689   : > { %2819 = shalt.err (!%p2816_p1)
}
 0x68a   : > { %s2820_s20 = scalar_lea.hbm %s3598_s1, 256  ;;  %s2824_s14 = scalar_lea.hbm %s3654_s13, 512 }
 0x68b   : > { %p2821_p0 = scmp.ne.s32.totalorder %s3598_s1, %s2820_s20  ;;  %p2825_p9 = scmp.lt.u32.totalorder %s3598_s1, %s3654_s13 }
 0x68c   : > { %p2826_p12 = scmp.lt.u32.totalorder %s2824_s14, %s2820_s20  ;;  %p2828_p2 = scmp.lt.u32.totalorder %s2820_s20, %s3598_s1 }
 0x68d   : > { %p2822_p6 = pnand %p2821_p0, %p3721_p3 }
 0x68e   : > { %p2827_p10 = por %p2826_p12, %p2825_p9 }
 0x68f   : > { %p2823_p5 = pneg %p2822_p6 }
 0x690   : > { %p2829_p4 = por %p2828_p2, %p2827_p10 }
 0x692   : > { %p2830_p7 = pnand %p2829_p4, %p2823_p5 }
 0x694   : > { %2833 = shalt.err (!%p2830_p7)
}
 0x695   : > { %s2892_s23 = smov 128   ;;  %s2893_s15 = smov 8  }
 0x696   : > { %2483 = dma.vmem_to_hbm [thread:$0]  (%p3721_p3), %s3593_s16, 256, %s3598_s1, %s3600_s21, %s2892_s23, %s2892_s23, %s2893_s15  }
 0x697 PF: > { %s3722_s27 = sld [smem:[#allocation18_spill]]  ;;  %s3723_s30 = sld [smem:[#allocation16_spill]] }
 0x698   : > { %s3724_s25 = sld [smem:[#allocation21_spill]] }
 0x69d   : > { %p2510_p8 = scmp.ge.s32.totalorder %s3722_s27, 2  ;;  %s2099_s26 = sand.u32 1, %s3723_s30  }
 0x69e   : > { %p3725_p11 = scmp.ne.s32.totalorder %s3724_s25, 0  ;;  %s2100_s10 = scalar_lea.sflag [#allocation5], %s2099_s26 }
 0x6a0   : > { %p2499_p13 = pnand %p2510_p8, %p3725_p11 }
 0x6a2   : > { %2863 = dma.done.wait (!%p2499_p13), %s2100_s10, 256  }
 0x6a3   : > { %2865 = vsyncadd (!%p2499_p13), %s2100_s10, 4294967040  ;;  %s3726_s30 = sld [smem:[#allocation19_spill]]  ;;  %s3727_s24 = sld [smem:[#allocation17_spill]] }
 0x6a4   : > { %s3728_s29 = sld [smem:[#allocation20_spill]]  ;;  %s3729_s27 = smov %s2872_s28 }
 0x6a9   : > { %p28_p1 = scmp.ge.s32.totalorder %s3726_s30, 4   ;;  %s3730_s28 = smov %s3727_s24 }
 0x6ab   :  { %30 = sbr.rel (!%p28_p1) target bundleno = 9 (0x9), region = 124 }
 0x6b2   :  { %2105 = vsyncpa [#allocation4], 1 }
 0x6b3   :  { %2107 = vsyncpa [#allocation4 + $0x1], 1 }
 0x6b4   :  { %2108 = vsyncpa [#allocation7], 1 }
 0x6b5   :  { %2109 = vsyncpa [#allocation10], 1 }
 0x6b6   :  { %2110 = vsyncpa [#allocation5], 1 }
 0x6b7   :  { %2112 = vsyncpa [#allocation5 + $0x1], 1 }

</bundles_post_ra>
